<compile_context>
chip_gen: v7x
topology: tpu7x:2x2x1
jax: 0.10.0
libtpu: 0.0.40
codegen_flags: <defaults>
</compile_context>

<pallas_src>
import math
import jax
import jax.numpy as jnp
from jax import lax
from jax.experimental import pallas as pl

# ---- model hyper-parameters (small, synthetic) -------------------------------
B       = 2
S_DEC   = 8          # decoder (target) sequence length
S_ENC   = 16         # encoder (memory) sequence length
D_MODEL = 32
N_HEADS = 4
D_HEAD  = D_MODEL // N_HEADS
D_FF    = 128
EPS     = 1e-6
NEG_INF = -1e9
INV_SCALE = 1.0 / math.sqrt(D_HEAD)

BS_DEC = B * S_DEC   # 16 flattened decoder rows
BS_ENC = B * S_ENC   # 32 flattened encoder rows


# ------------------------------ fused kernel ----------------------------------
def _decoder_layer_kernel(
    x_ref, enc_ref, la_bias_ref, pad_bias_ref,
    ln1_g_ref, ln1_b_ref, ln2_g_ref, ln2_b_ref, ln3_g_ref, ln3_b_ref,
    sa_wqkv_ref, sa_bqkv_ref, sa_wo_ref, sa_bo_ref,
    ca_wq_ref, ca_bq_ref, ca_wkv_ref, ca_bkv_ref, ca_wo_ref, ca_bo_ref,
    ff_w1_ref, ff_b1_ref, ff_w2_ref, ff_b2_ref,
    o_ref,
):
    f32 = jnp.float32

    def layer_norm(h, g, b):
        m = jnp.mean(h, axis=-1, keepdims=True)
        v = jnp.mean((h - m) ** 2, axis=-1, keepdims=True)
        return (h - m) * lax.rsqrt(v + EPS) * g + b

    def attention(q, k, v, bias, wo, bo):
        # q: (BS_DEC, D) already scaled by 1/sqrt(d_head) via its weights.
        # k, v: (N_kv, D) flattened over batch.
        # bias: (N_HEADS*BS_DEC, N_kv) additive mask, block-diagonal over batch.
        score_blocks = []
        for h in range(N_HEADS):                      # static loop over 4 heads
            lo, hi = h * D_HEAD, (h + 1) * D_HEAD
            score_blocks.append(
                lax.dot_general(q[:, lo:hi], k[:, lo:hi],
                                (((1,), (1,)), ((), ())),
                                preferred_element_type=f32))
        # One head-stacked slab -> mask add + softmax done a single time.
        scores = jnp.concatenate(score_blocks, axis=0) + bias
        scores = scores - jnp.max(scores, axis=-1, keepdims=True)
        p = jnp.exp(scores)
        p = p * pl.reciprocal(jnp.sum(p, axis=-1, keepdims=True), approx=True)
        outs = []
        for h in range(N_HEADS):
            lo, hi = h * D_HEAD, (h + 1) * D_HEAD
            p_h = p[h * BS_DEC:(h + 1) * BS_DEC]      # (BS_DEC, N_kv)
            outs.append(jnp.dot(p_h, v[:, lo:hi], preferred_element_type=f32))
        concat = jnp.concatenate(outs, axis=-1)       # (BS_DEC, D)
        return jnp.dot(concat, wo, preferred_element_type=f32) + bo

    x = x_ref[...]        # (BS_DEC, D)
    enc = enc_ref[...]    # (BS_ENC, D)

    # residual[0]: self-attention on LN(x), fused QKV projection
    xn = layer_norm(x, ln1_g_ref[...], ln1_b_ref[...])
    qkv = jnp.dot(xn, sa_wqkv_ref[...], preferred_element_type=f32) + sa_bqkv_ref[...]
    x = x + attention(qkv[:, :D_MODEL],
                      qkv[:, D_MODEL:2 * D_MODEL],
                      qkv[:, 2 * D_MODEL:],
                      la_bias_ref[...], sa_wo_ref[...], sa_bo_ref[...])

    # residual[1]: cross-attention, queries = LN(x), keys/values = encoder output
    xn = layer_norm(x, ln2_g_ref[...], ln2_b_ref[...])
    q = jnp.dot(xn, ca_wq_ref[...], preferred_element_type=f32) + ca_bq_ref[...]
    kv = jnp.dot(enc, ca_wkv_ref[...], preferred_element_type=f32) + ca_bkv_ref[...]
    x = x + attention(q, kv[:, :D_MODEL], kv[:, D_MODEL:],
                      pad_bias_ref[...], ca_wo_ref[...], ca_bo_ref[...])

    # residual[2]: position-wise feed-forward
    xn = layer_norm(x, ln3_g_ref[...], ln3_b_ref[...])
    hdn = jnp.maximum(
        jnp.dot(xn, ff_w1_ref[...], preferred_element_type=f32) + ff_b1_ref[...], 0.0)
    x = x + jnp.dot(hdn, ff_w2_ref[...], preferred_element_type=f32) + ff_b2_ref[...]

    o_ref[...] = x        # single (BS_DEC, D) store


# ------------------------------ host wrapper -----------------------------------
def _block_diag_bias(mask):
    """(B, Sq, Skv) int mask -> (H*B*Sq, B*Skv) additive fp32 bias.

    Within-batch blocks: 0 where mask!=0, -1e9 where mask==0.
    Cross-batch blocks:  -1e9 (so flattened-batch attention stays block-diagonal).
    Tiled over heads along the row axis (head-major, matching the kernel slab).
    """
    b, sq, skv = mask.shape
    per_batch = jnp.where(mask == 0, jnp.float32(NEG_INF), jnp.float32(0.0))
    eye = jnp.eye(b, dtype=jnp.float32)
    full = (eye[:, None, :, None] * per_batch[:, :, None, :]
            + (1.0 - eye)[:, None, :, None] * jnp.float32(NEG_INF))
    full = full.reshape(b * sq, b * skv)
    return jnp.tile(full, (N_HEADS, 1))


@jax.jit
def decoder_layer(x, encoder_output, padding_mask, look_ahead_mask, params):
    sa, ca, ff = params["sa"], params["ca"], params["ff"]

    # Fused projections; fold 1/sqrt(d_head) into the query weights (free, host-side).
    sa_wqkv = jnp.concatenate([sa["wq"] * INV_SCALE, sa["wk"], sa["wv"]], axis=1)
    sa_bqkv = jnp.concatenate([sa["bq"] * INV_SCALE, sa["bk"], sa["bv"]], axis=1)
    ca_wq = ca["wq"] * INV_SCALE
    ca_bq = ca["bq"] * INV_SCALE
    ca_wkv = jnp.concatenate([ca["wk"], ca["wv"]], axis=1)
    ca_bkv = jnp.concatenate([ca["bk"], ca["bv"]], axis=1)

    la_bias = _block_diag_bias(look_ahead_mask)    # (H*B*S_DEC, B*S_DEC)
    pad_bias = _block_diag_bias(padding_mask)      # (H*B*S_DEC, B*S_ENC)

    x2 = x.reshape(BS_DEC, D_MODEL)
    enc2 = encoder_output.reshape(BS_ENC, D_MODEL)

    out = pl.pallas_call(
        _decoder_layer_kernel,
        out_shape=jax.ShapeDtypeStruct((BS_DEC, D_MODEL), jnp.float32),
    )(x2, enc2, la_bias, pad_bias,
      params["ln1_g"], params["ln1_b"], params["ln2_g"], params["ln2_b"],
      params["ln3_g"], params["ln3_b"],
      sa_wqkv, sa_bqkv, sa["wo"], sa["bo"],
      ca_wq, ca_bq, ca_wkv, ca_bkv, ca["wo"], ca["bo"],
      ff["w1"], ff["b1"], ff["w2"], ff["b2"])

    return out.reshape(B, S_DEC, D_MODEL)


# --------------------------- pure-JAX reference --------------------------------
def _layernorm_ref(x, g, b):
    m = x.mean(-1, keepdims=True)
    v = ((x - m) ** 2).mean(-1, keepdims=True)
    return (x - m) * jax.lax.rsqrt(v + EPS) * g + b


def _mha_ref(qn, kv, mask, p):
    q = qn @ p["wq"] + p["bq"]
    k = kv @ p["wk"] + p["bk"]
    v = kv @ p["wv"] + p["bv"]
    Bb, Sq, _ = q.shape
    Skv = k.shape[1]
    qh = q.reshape(Bb, Sq, N_HEADS, D_HEAD)
    kh = k.reshape(Bb, Skv, N_HEADS, D_HEAD)
    vh = v.reshape(Bb, Skv, N_HEADS, D_HEAD)
    scores = jnp.einsum("bqhd,bkhd->bhqk", qh, kh) * INV_SCALE
    scores = jnp.where(mask[:, None, :, :] == 0, NEG_INF, scores)
    attn = jax.nn.softmax(scores, axis=-1)
    out = jnp.einsum("bhqk,bkhd->bqhd", attn, vh).reshape(Bb, Sq, D_MODEL)
    return out @ p["wo"] + p["bo"]


def _decoder_layer_ref(x, enc, pad_mask, la_mask, params):
    x = x + _mha_ref(_layernorm_ref(x, params["ln1_g"], params["ln1_b"]),
                     _layernorm_ref(x, params["ln1_g"], params["ln1_b"]), la_mask, params["sa"])
    x = x + _mha_ref(_layernorm_ref(x, params["ln2_g"], params["ln2_b"]), enc, pad_mask, params["ca"])
    xn = _layernorm_ref(x, params["ln3_g"], params["ln3_b"])
    ff = params["ff"]
    x = x + (jnp.maximum(xn @ ff["w1"] + ff["b1"], 0.0) @ ff["w2"] + ff["b2"])
    return x


# ------------------------------ init & main ------------------------------------
def init_params(key):
    ks = iter(jax.random.split(key, 32))

    def w(shape):
        return (jax.random.normal(next(ks), shape, jnp.float32) * 0.02).astype(jnp.float32)

    def attn_params():
        return {
            "wq": w((D_MODEL, D_MODEL)), "bq": jnp.zeros((1, D_MODEL), jnp.float32),
            "wk": w((D_MODEL, D_MODEL)), "bk": jnp.zeros((1, D_MODEL), jnp.float32),
            "wv": w((D_MODEL, D_MODEL)), "bv": jnp.zeros((1, D_MODEL), jnp.float32),
            "wo": w((D_MODEL, D_MODEL)), "bo": jnp.zeros((1, D_MODEL), jnp.float32),
        }

    return {
        "ln1_g": jnp.ones((1, D_MODEL), jnp.float32), "ln1_b": jnp.zeros((1, D_MODEL), jnp.float32),
        "ln2_g": jnp.ones((1, D_MODEL), jnp.float32), "ln2_b": jnp.zeros((1, D_MODEL), jnp.float32),
        "ln3_g": jnp.ones((1, D_MODEL), jnp.float32), "ln3_b": jnp.zeros((1, D_MODEL), jnp.float32),
        "sa": attn_params(),
        "ca": attn_params(),
        "ff": {
            "w1": w((D_MODEL, D_FF)), "b1": jnp.zeros((1, D_FF), jnp.float32),
            "w2": w((D_FF, D_MODEL)), "b2": jnp.zeros((1, D_MODEL), jnp.float32),
        },
    }


if __name__ == "__main__":
    key = jax.random.PRNGKey(0)
    k_x, k_enc, k_p = jax.random.split(key, 3)

    x = jax.random.normal(k_x, (B, S_DEC, D_MODEL), jnp.float32)
    encoder_output = jax.random.normal(k_enc, (B, S_ENC, D_MODEL), jnp.float32)

    # look-ahead (causal) mask, same for every batch element: (B, S_dec, S_dec)
    look_ahead_mask = jnp.broadcast_to(
        jnp.tril(jnp.ones((S_DEC, S_DEC), jnp.int32)), (B, S_DEC, S_DEC))
    # padding mask over encoder positions: (B, S_dec, S_enc)
    valid_lens = jnp.array([S_ENC, 10], jnp.int32)
    padding_mask = (jnp.arange(S_ENC)[None, None, :] < valid_lens[:, None, None]).astype(jnp.int32)
    padding_mask = jnp.broadcast_to(padding_mask, (B, S_DEC, S_ENC))

    params = init_params(k_p)

    out = decoder_layer(x, encoder_output, padding_mask, look_ahead_mask, params)
    out = jax.block_until_ready(out)

    ref = _decoder_layer_ref(x, encoder_output, padding_mask, look_ahead_mask, params)
    assert out.shape == (B, S_DEC, D_MODEL) and out.dtype == jnp.float32
    assert jnp.allclose(out, ref, atol=1e-4, rtol=1e-4), float(jnp.max(jnp.abs(out - ref)))

    print("KERNEL_OK")
</pallas_src>

<mosaic_0001>
module attributes {stable_mosaic.version = 11 : i64} {
  func.func @_decoder_layer_kernel(%arg0: memref<16x32xf32, #tpu.memory_space<vmem>>, %arg1: memref<32x32xf32, #tpu.memory_space<vmem>>, %arg2: memref<64x16xf32, #tpu.memory_space<vmem>>, %arg3: memref<64x32xf32, #tpu.memory_space<vmem>>, %arg4: memref<1x32xf32, #tpu.memory_space<vmem>>, %arg5: memref<1x32xf32, #tpu.memory_space<vmem>>, %arg6: memref<1x32xf32, #tpu.memory_space<vmem>>, %arg7: memref<1x32xf32, #tpu.memory_space<vmem>>, %arg8: memref<1x32xf32, #tpu.memory_space<vmem>>, %arg9: memref<1x32xf32, #tpu.memory_space<vmem>>, %arg10: memref<32x96xf32, #tpu.memory_space<vmem>>, %arg11: memref<1x96xf32, #tpu.memory_space<vmem>>, %arg12: memref<32x32xf32, #tpu.memory_space<vmem>>, %arg13: memref<1x32xf32, #tpu.memory_space<vmem>>, %arg14: memref<32x32xf32, #tpu.memory_space<vmem>>, %arg15: memref<1x32xf32, #tpu.memory_space<vmem>>, %arg16: memref<32x64xf32, #tpu.memory_space<vmem>>, %arg17: memref<1x64xf32, #tpu.memory_space<vmem>>, %arg18: memref<32x32xf32, #tpu.memory_space<vmem>>, %arg19: memref<1x32xf32, #tpu.memory_space<vmem>>, %arg20: memref<32x128xf32, #tpu.memory_space<vmem>>, %arg21: memref<1x128xf32, #tpu.memory_space<vmem>>, %arg22: memref<128x32xf32, #tpu.memory_space<vmem>>, %arg23: memref<1x32xf32, #tpu.memory_space<vmem>>, %arg24: memref<16x32xf32, #tpu.memory_space<vmem>>) attributes {dimension_semantics = [], scalar_prefetch = 0 : i64, scratch_operands = 0 : i64, tpu.core_type = #tpu.core_type<tc>} {
    %c0 = arith.constant 0 : index
    %c0_0 = arith.constant 0 : index
    %0 = vector.load %arg0[%c0, %c0_0] : memref<16x32xf32, #tpu.memory_space<vmem>>, vector<16x32xf32>
    %c0_1 = arith.constant 0 : index
    %c0_2 = arith.constant 0 : index
    %1 = vector.load %arg1[%c0_1, %c0_2] : memref<32x32xf32, #tpu.memory_space<vmem>>, vector<32x32xf32>
    %c0_3 = arith.constant 0 : index
    %c0_4 = arith.constant 0 : index
    %2 = vector.load %arg4[%c0_3, %c0_4] : memref<1x32xf32, #tpu.memory_space<vmem>>, vector<1x32xf32>
    %c0_5 = arith.constant 0 : index
    %c0_6 = arith.constant 0 : index
    %3 = vector.load %arg5[%c0_5, %c0_6] : memref<1x32xf32, #tpu.memory_space<vmem>>, vector<1x32xf32>
    %cst = arith.constant dense<0.000000e+00> : vector<16xf32>
    %4 = vector.multi_reduction <add>, %0, %cst [1] : vector<16x32xf32> to vector<16xf32>
    %5 = vector.shape_cast %4 : vector<16xf32> to vector<16x1xf32>
    %cst_7 = arith.constant 3.200000e+01 : f32
    %6 = vector.broadcast %cst_7 : f32 to vector<16x1xf32>
    %7 = arith.divf %5, %6 : vector<16x1xf32>
    %8 = vector.broadcast %7 : vector<16x1xf32> to vector<16x32xf32>
    %9 = arith.subf %0, %8 : vector<16x32xf32>
    %10 = arith.mulf %9, %9 : vector<16x32xf32>
    %cst_8 = arith.constant dense<0.000000e+00> : vector<16xf32>
    %11 = vector.multi_reduction <add>, %10, %cst_8 [1] : vector<16x32xf32> to vector<16xf32>
    %12 = vector.shape_cast %11 : vector<16xf32> to vector<16x1xf32>
    %cst_9 = arith.constant 3.200000e+01 : f32
    %13 = vector.broadcast %cst_9 : f32 to vector<16x1xf32>
    %14 = arith.divf %12, %13 : vector<16x1xf32>
    %15 = vector.broadcast %7 : vector<16x1xf32> to vector<16x32xf32>
    %16 = arith.subf %0, %15 : vector<16x32xf32>
    %cst_10 = arith.constant 9.99999997E-7 : f32
    %17 = vector.broadcast %cst_10 : f32 to vector<16x1xf32>
    %18 = arith.addf %14, %17 : vector<16x1xf32>
    %19 = math.rsqrt %18 : vector<16x1xf32>
    %20 = vector.broadcast %19 : vector<16x1xf32> to vector<16x32xf32>
    %21 = arith.mulf %16, %20 : vector<16x32xf32>
    %22 = vector.broadcast %2 : vector<1x32xf32> to vector<16x32xf32>
    %23 = arith.mulf %21, %22 : vector<16x32xf32>
    %24 = vector.broadcast %3 : vector<1x32xf32> to vector<16x32xf32>
    %25 = arith.addf %23, %24 : vector<16x32xf32>
    %c0_11 = arith.constant 0 : index
    %c0_12 = arith.constant 0 : index
    %26 = vector.load %arg10[%c0_11, %c0_12] : memref<32x96xf32, #tpu.memory_space<vmem>>, vector<32x96xf32>
    %cst_13 = arith.constant dense<0.000000e+00> : vector<16x96xf32>
    %27 = tpu.matmul %25, %26, %cst_13 {dimension_numbers = #tpu.dot_dimension_numbers<[1], [0], [0], [1], [0, 0, 1, 1], [], []>} : vector<16x32xf32>, vector<32x96xf32>, vector<16x96xf32> -> vector<16x96xf32>
    %c0_14 = arith.constant 0 : index
    %c0_15 = arith.constant 0 : index
    %28 = vector.load %arg11[%c0_14, %c0_15] : memref<1x96xf32, #tpu.memory_space<vmem>>, vector<1x96xf32>
    %29 = vector.broadcast %28 : vector<1x96xf32> to vector<16x96xf32>
    %30 = arith.addf %27, %29 : vector<16x96xf32>
    %31 = vector.extract_strided_slice %30 {offsets = [0, 0], sizes = [16, 32], strides = [1, 1]} : vector<16x96xf32> to vector<16x32xf32>
    %32 = vector.extract_strided_slice %30 {offsets = [0, 32], sizes = [16, 32], strides = [1, 1]} : vector<16x96xf32> to vector<16x32xf32>
    %33 = vector.extract_strided_slice %30 {offsets = [0, 64], sizes = [16, 32], strides = [1, 1]} : vector<16x96xf32> to vector<16x32xf32>
    %c0_16 = arith.constant 0 : index
    %c0_17 = arith.constant 0 : index
    %34 = vector.load %arg2[%c0_16, %c0_17] : memref<64x16xf32, #tpu.memory_space<vmem>>, vector<64x16xf32>
    %c0_18 = arith.constant 0 : index
    %c0_19 = arith.constant 0 : index
    %35 = vector.load %arg12[%c0_18, %c0_19] : memref<32x32xf32, #tpu.memory_space<vmem>>, vector<32x32xf32>
    %c0_20 = arith.constant 0 : index
    %c0_21 = arith.constant 0 : index
    %36 = vector.load %arg13[%c0_20, %c0_21] : memref<1x32xf32, #tpu.memory_space<vmem>>, vector<1x32xf32>
    %37 = vector.extract_strided_slice %31 {offsets = [0, 0], sizes = [16, 8], strides = [1, 1]} : vector<16x32xf32> to vector<16x8xf32>
    %38 = vector.extract_strided_slice %32 {offsets = [0, 0], sizes = [16, 8], strides = [1, 1]} : vector<16x32xf32> to vector<16x8xf32>
    %cst_22 = arith.constant dense<0.000000e+00> : vector<16x16xf32>
    %39 = tpu.matmul %37, %38, %cst_22 {dimension_numbers = #tpu.dot_dimension_numbers<[1], [1], [0], [0], [0, 0, 1, 0], [], []>} : vector<16x8xf32>, vector<16x8xf32>, vector<16x16xf32> -> vector<16x16xf32>
    %40 = vector.extract_strided_slice %31 {offsets = [0, 8], sizes = [16, 8], strides = [1, 1]} : vector<16x32xf32> to vector<16x8xf32>
    %41 = vector.extract_strided_slice %32 {offsets = [0, 8], sizes = [16, 8], strides = [1, 1]} : vector<16x32xf32> to vector<16x8xf32>
    %cst_23 = arith.constant dense<0.000000e+00> : vector<16x16xf32>
    %42 = tpu.matmul %40, %41, %cst_23 {dimension_numbers = #tpu.dot_dimension_numbers<[1], [1], [0], [0], [0, 0, 1, 0], [], []>} : vector<16x8xf32>, vector<16x8xf32>, vector<16x16xf32> -> vector<16x16xf32>
    %43 = vector.extract_strided_slice %31 {offsets = [0, 16], sizes = [16, 8], strides = [1, 1]} : vector<16x32xf32> to vector<16x8xf32>
    %44 = vector.extract_strided_slice %32 {offsets = [0, 16], sizes = [16, 8], strides = [1, 1]} : vector<16x32xf32> to vector<16x8xf32>
    %cst_24 = arith.constant dense<0.000000e+00> : vector<16x16xf32>
    %45 = tpu.matmul %43, %44, %cst_24 {dimension_numbers = #tpu.dot_dimension_numbers<[1], [1], [0], [0], [0, 0, 1, 0], [], []>} : vector<16x8xf32>, vector<16x8xf32>, vector<16x16xf32> -> vector<16x16xf32>
    %46 = vector.extract_strided_slice %31 {offsets = [0, 24], sizes = [16, 8], strides = [1, 1]} : vector<16x32xf32> to vector<16x8xf32>
    %47 = vector.extract_strided_slice %32 {offsets = [0, 24], sizes = [16, 8], strides = [1, 1]} : vector<16x32xf32> to vector<16x8xf32>
    %cst_25 = arith.constant dense<0.000000e+00> : vector<16x16xf32>
    %48 = tpu.matmul %46, %47, %cst_25 {dimension_numbers = #tpu.dot_dimension_numbers<[1], [1], [0], [0], [0, 0, 1, 0], [], []>} : vector<16x8xf32>, vector<16x8xf32>, vector<16x16xf32> -> vector<16x16xf32>
    %49 = tpu.concatenate %39, %42, %45, %48 in 0 : vector<16x16xf32>, vector<16x16xf32>, vector<16x16xf32>, vector<16x16xf32> -> vector<64x16xf32>
    %50 = arith.addf %49, %34 : vector<64x16xf32>
    %cst_26 = arith.constant dense<0xFF800000> : vector<64xf32>
    %51 = vector.multi_reduction <maximumf>, %50, %cst_26 [1] : vector<64x16xf32> to vector<64xf32>
    %52 = vector.shape_cast %51 : vector<64xf32> to vector<64x1xf32>
    %53 = vector.broadcast %52 : vector<64x1xf32> to vector<64x16xf32>
    %54 = arith.subf %50, %53 : vector<64x16xf32>
    %55 = math.exp %54 : vector<64x16xf32>
    %cst_27 = arith.constant dense<0.000000e+00> : vector<64xf32>
    %56 = vector.multi_reduction <add>, %55, %cst_27 [1] : vector<64x16xf32> to vector<64xf32>
    %57 = vector.shape_cast %56 : vector<64xf32> to vector<64x1xf32>
    %58 = tpu.reciprocal %57 {approx = true} : vector<64x1xf32> -> vector<64x1xf32>
    %59 = vector.broadcast %58 : vector<64x1xf32> to vector<64x16xf32>
    %60 = arith.mulf %55, %59 : vector<64x16xf32>
    %61 = vector.extract_strided_slice %60 {offsets = [0, 0], sizes = [16, 16], strides = [1, 1]} : vector<64x16xf32> to vector<16x16xf32>
    %62 = vector.extract_strided_slice %33 {offsets = [0, 0], sizes = [16, 8], strides = [1, 1]} : vector<16x32xf32> to vector<16x8xf32>
    %cst_28 = arith.constant dense<0.000000e+00> : vector<16x8xf32>
    %63 = tpu.matmul %61, %62, %cst_28 {dimension_numbers = #tpu.dot_dimension_numbers<[1], [0], [0], [1], [0, 0, 1, 1], [], []>} : vector<16x16xf32>, vector<16x8xf32>, vector<16x8xf32> -> vector<16x8xf32>
    %64 = vector.extract_strided_slice %60 {offsets = [16, 0], sizes = [16, 16], strides = [1, 1]} : vector<64x16xf32> to vector<16x16xf32>
    %65 = vector.extract_strided_slice %33 {offsets = [0, 8], sizes = [16, 8], strides = [1, 1]} : vector<16x32xf32> to vector<16x8xf32>
    %cst_29 = arith.constant dense<0.000000e+00> : vector<16x8xf32>
    %66 = tpu.matmul %64, %65, %cst_29 {dimension_numbers = #tpu.dot_dimension_numbers<[1], [0], [0], [1], [0, 0, 1, 1], [], []>} : vector<16x16xf32>, vector<16x8xf32>, vector<16x8xf32> -> vector<16x8xf32>
    %67 = vector.extract_strided_slice %60 {offsets = [32, 0], sizes = [16, 16], strides = [1, 1]} : vector<64x16xf32> to vector<16x16xf32>
    %68 = vector.extract_strided_slice %33 {offsets = [0, 16], sizes = [16, 8], strides = [1, 1]} : vector<16x32xf32> to vector<16x8xf32>
    %cst_30 = arith.constant dense<0.000000e+00> : vector<16x8xf32>
    %69 = tpu.matmul %67, %68, %cst_30 {dimension_numbers = #tpu.dot_dimension_numbers<[1], [0], [0], [1], [0, 0, 1, 1], [], []>} : vector<16x16xf32>, vector<16x8xf32>, vector<16x8xf32> -> vector<16x8xf32>
    %70 = vector.extract_strided_slice %60 {offsets = [48, 0], sizes = [16, 16], strides = [1, 1]} : vector<64x16xf32> to vector<16x16xf32>
    %71 = vector.extract_strided_slice %33 {offsets = [0, 24], sizes = [16, 8], strides = [1, 1]} : vector<16x32xf32> to vector<16x8xf32>
    %cst_31 = arith.constant dense<0.000000e+00> : vector<16x8xf32>
    %72 = tpu.matmul %70, %71, %cst_31 {dimension_numbers = #tpu.dot_dimension_numbers<[1], [0], [0], [1], [0, 0, 1, 1], [], []>} : vector<16x16xf32>, vector<16x8xf32>, vector<16x8xf32> -> vector<16x8xf32>
    %73 = tpu.concatenate %63, %66, %69, %72 in 1 : vector<16x8xf32>, vector<16x8xf32>, vector<16x8xf32>, vector<16x8xf32> -> vector<16x32xf32>
    %cst_32 = arith.constant dense<0.000000e+00> : vector<16x32xf32>
    %74 = tpu.matmul %73, %35, %cst_32 {dimension_numbers = #tpu.dot_dimension_numbers<[1], [0], [0], [1], [0, 0, 1, 1], [], []>} : vector<16x32xf32>, vector<32x32xf32>, vector<16x32xf32> -> vector<16x32xf32>
    %75 = vector.broadcast %36 : vector<1x32xf32> to vector<16x32xf32>
    %76 = arith.addf %74, %75 : vector<16x32xf32>
    %77 = arith.addf %0, %76 : vector<16x32xf32>
    %c0_33 = arith.constant 0 : index
    %c0_34 = arith.constant 0 : index
    %78 = vector.load %arg6[%c0_33, %c0_34] : memref<1x32xf32, #tpu.memory_space<vmem>>, vector<1x32xf32>
    %c0_35 = arith.constant 0 : index
    %c0_36 = arith.constant 0 : index
    %79 = vector.load %arg7[%c0_35, %c0_36] : memref<1x32xf32, #tpu.memory_space<vmem>>, vector<1x32xf32>
    %cst_37 = arith.constant dense<0.000000e+00> : vector<16xf32>
    %80 = vector.multi_reduction <add>, %77, %cst_37 [1] : vector<16x32xf32> to vector<16xf32>
    %81 = vector.shape_cast %80 : vector<16xf32> to vector<16x1xf32>
    %cst_38 = arith.constant 3.200000e+01 : f32
    %82 = vector.broadcast %cst_38 : f32 to vector<16x1xf32>
    %83 = arith.divf %81, %82 : vector<16x1xf32>
    %84 = vector.broadcast %83 : vector<16x1xf32> to vector<16x32xf32>
    %85 = arith.subf %77, %84 : vector<16x32xf32>
    %86 = arith.mulf %85, %85 : vector<16x32xf32>
    %cst_39 = arith.constant dense<0.000000e+00> : vector<16xf32>
    %87 = vector.multi_reduction <add>, %86, %cst_39 [1] : vector<16x32xf32> to vector<16xf32>
    %88 = vector.shape_cast %87 : vector<16xf32> to vector<16x1xf32>
    %cst_40 = arith.constant 3.200000e+01 : f32
    %89 = vector.broadcast %cst_40 : f32 to vector<16x1xf32>
    %90 = arith.divf %88, %89 : vector<16x1xf32>
    %91 = vector.broadcast %83 : vector<16x1xf32> to vector<16x32xf32>
    %92 = arith.subf %77, %91 : vector<16x32xf32>
    %cst_41 = arith.constant 9.99999997E-7 : f32
    %93 = vector.broadcast %cst_41 : f32 to vector<16x1xf32>
    %94 = arith.addf %90, %93 : vector<16x1xf32>
    %95 = math.rsqrt %94 : vector<16x1xf32>
    %96 = vector.broadcast %95 : vector<16x1xf32> to vector<16x32xf32>
    %97 = arith.mulf %92, %96 : vector<16x32xf32>
    %98 = vector.broadcast %78 : vector<1x32xf32> to vector<16x32xf32>
    %99 = arith.mulf %97, %98 : vector<16x32xf32>
    %100 = vector.broadcast %79 : vector<1x32xf32> to vector<16x32xf32>
    %101 = arith.addf %99, %100 : vector<16x32xf32>
    %c0_42 = arith.constant 0 : index
    %c0_43 = arith.constant 0 : index
    %102 = vector.load %arg14[%c0_42, %c0_43] : memref<32x32xf32, #tpu.memory_space<vmem>>, vector<32x32xf32>
    %cst_44 = arith.constant dense<0.000000e+00> : vector<16x32xf32>
    %103 = tpu.matmul %101, %102, %cst_44 {dimension_numbers = #tpu.dot_dimension_numbers<[1], [0], [0], [1], [0, 0, 1, 1], [], []>} : vector<16x32xf32>, vector<32x32xf32>, vector<16x32xf32> -> vector<16x32xf32>
    %c0_45 = arith.constant 0 : index
    %c0_46 = arith.constant 0 : index
    %104 = vector.load %arg15[%c0_45, %c0_46] : memref<1x32xf32, #tpu.memory_space<vmem>>, vector<1x32xf32>
    %105 = vector.broadcast %104 : vector<1x32xf32> to vector<16x32xf32>
    %106 = arith.addf %103, %105 : vector<16x32xf32>
    %c0_47 = arith.constant 0 : index
    %c0_48 = arith.constant 0 : index
    %107 = vector.load %arg16[%c0_47, %c0_48] : memref<32x64xf32, #tpu.memory_space<vmem>>, vector<32x64xf32>
    %cst_49 = arith.constant dense<0.000000e+00> : vector<32x64xf32>
    %108 = tpu.matmul %1, %107, %cst_49 {dimension_numbers = #tpu.dot_dimension_numbers<[1], [0], [0], [1], [0, 0, 1, 1], [], []>} : vector<32x32xf32>, vector<32x64xf32>, vector<32x64xf32> -> vector<32x64xf32>
    %c0_50 = arith.constant 0 : index
    %c0_51 = arith.constant 0 : index
    %109 = vector.load %arg17[%c0_50, %c0_51] : memref<1x64xf32, #tpu.memory_space<vmem>>, vector<1x64xf32>
    %110 = vector.broadcast %109 : vector<1x64xf32> to vector<32x64xf32>
    %111 = arith.addf %108, %110 : vector<32x64xf32>
    %112 = vector.extract_strided_slice %111 {offsets = [0, 0], sizes = [32, 32], strides = [1, 1]} : vector<32x64xf32> to vector<32x32xf32>
    %113 = vector.extract_strided_slice %111 {offsets = [0, 32], sizes = [32, 32], strides = [1, 1]} : vector<32x64xf32> to vector<32x32xf32>
    %c0_52 = arith.constant 0 : index
    %c0_53 = arith.constant 0 : index
    %114 = vector.load %arg3[%c0_52, %c0_53] : memref<64x32xf32, #tpu.memory_space<vmem>>, vector<64x32xf32>
    %c0_54 = arith.constant 0 : index
    %c0_55 = arith.constant 0 : index
    %115 = vector.load %arg18[%c0_54, %c0_55] : memref<32x32xf32, #tpu.memory_space<vmem>>, vector<32x32xf32>
    %c0_56 = arith.constant 0 : index
    %c0_57 = arith.constant 0 : index
    %116 = vector.load %arg19[%c0_56, %c0_57] : memref<1x32xf32, #tpu.memory_space<vmem>>, vector<1x32xf32>
    %117 = vector.extract_strided_slice %106 {offsets = [0, 0], sizes = [16, 8], strides = [1, 1]} : vector<16x32xf32> to vector<16x8xf32>
    %118 = vector.extract_strided_slice %112 {offsets = [0, 0], sizes = [32, 8], strides = [1, 1]} : vector<32x32xf32> to vector<32x8xf32>
    %cst_58 = arith.constant dense<0.000000e+00> : vector<16x32xf32>
    %119 = tpu.matmul %117, %118, %cst_58 {dimension_numbers = #tpu.dot_dimension_numbers<[1], [1], [0], [0], [0, 0, 1, 0], [], []>} : vector<16x8xf32>, vector<32x8xf32>, vector<16x32xf32> -> vector<16x32xf32>
    %120 = vector.extract_strided_slice %106 {offsets = [0, 8], sizes = [16, 8], strides = [1, 1]} : vector<16x32xf32> to vector<16x8xf32>
    %121 = vector.extract_strided_slice %112 {offsets = [0, 8], sizes = [32, 8], strides = [1, 1]} : vector<32x32xf32> to vector<32x8xf32>
    %cst_59 = arith.constant dense<0.000000e+00> : vector<16x32xf32>
    %122 = tpu.matmul %120, %121, %cst_59 {dimension_numbers = #tpu.dot_dimension_numbers<[1], [1], [0], [0], [0, 0, 1, 0], [], []>} : vector<16x8xf32>, vector<32x8xf32>, vector<16x32xf32> -> vector<16x32xf32>
    %123 = vector.extract_strided_slice %106 {offsets = [0, 16], sizes = [16, 8], strides = [1, 1]} : vector<16x32xf32> to vector<16x8xf32>
    %124 = vector.extract_strided_slice %112 {offsets = [0, 16], sizes = [32, 8], strides = [1, 1]} : vector<32x32xf32> to vector<32x8xf32>
    %cst_60 = arith.constant dense<0.000000e+00> : vector<16x32xf32>
    %125 = tpu.matmul %123, %124, %cst_60 {dimension_numbers = #tpu.dot_dimension_numbers<[1], [1], [0], [0], [0, 0, 1, 0], [], []>} : vector<16x8xf32>, vector<32x8xf32>, vector<16x32xf32> -> vector<16x32xf32>
    %126 = vector.extract_strided_slice %106 {offsets = [0, 24], sizes = [16, 8], strides = [1, 1]} : vector<16x32xf32> to vector<16x8xf32>
    %127 = vector.extract_strided_slice %112 {offsets = [0, 24], sizes = [32, 8], strides = [1, 1]} : vector<32x32xf32> to vector<32x8xf32>
    %cst_61 = arith.constant dense<0.000000e+00> : vector<16x32xf32>
    %128 = tpu.matmul %126, %127, %cst_61 {dimension_numbers = #tpu.dot_dimension_numbers<[1], [1], [0], [0], [0, 0, 1, 0], [], []>} : vector<16x8xf32>, vector<32x8xf32>, vector<16x32xf32> -> vector<16x32xf32>
    %129 = tpu.concatenate %119, %122, %125, %128 in 0 : vector<16x32xf32>, vector<16x32xf32>, vector<16x32xf32>, vector<16x32xf32> -> vector<64x32xf32>
    %130 = arith.addf %129, %114 : vector<64x32xf32>
    %cst_62 = arith.constant dense<0xFF800000> : vector<64xf32>
    %131 = vector.multi_reduction <maximumf>, %130, %cst_62 [1] : vector<64x32xf32> to vector<64xf32>
    %132 = vector.shape_cast %131 : vector<64xf32> to vector<64x1xf32>
    %133 = vector.broadcast %132 : vector<64x1xf32> to vector<64x32xf32>
    %134 = arith.subf %130, %133 : vector<64x32xf32>
    %135 = math.exp %134 : vector<64x32xf32>
    %cst_63 = arith.constant dense<0.000000e+00> : vector<64xf32>
    %136 = vector.multi_reduction <add>, %135, %cst_63 [1] : vector<64x32xf32> to vector<64xf32>
    %137 = vector.shape_cast %136 : vector<64xf32> to vector<64x1xf32>
    %138 = tpu.reciprocal %137 {approx = true} : vector<64x1xf32> -> vector<64x1xf32>
    %139 = vector.broadcast %138 : vector<64x1xf32> to vector<64x32xf32>
    %140 = arith.mulf %135, %139 : vector<64x32xf32>
    %141 = vector.extract_strided_slice %140 {offsets = [0, 0], sizes = [16, 32], strides = [1, 1]} : vector<64x32xf32> to vector<16x32xf32>
    %142 = vector.extract_strided_slice %113 {offsets = [0, 0], sizes = [32, 8], strides = [1, 1]} : vector<32x32xf32> to vector<32x8xf32>
    %cst_64 = arith.constant dense<0.000000e+00> : vector<16x8xf32>
    %143 = tpu.matmul %141, %142, %cst_64 {dimension_numbers = #tpu.dot_dimension_numbers<[1], [0], [0], [1], [0, 0, 1, 1], [], []>} : vector<16x32xf32>, vector<32x8xf32>, vector<16x8xf32> -> vector<16x8xf32>
    %144 = vector.extract_strided_slice %140 {offsets = [16, 0], sizes = [16, 32], strides = [1, 1]} : vector<64x32xf32> to vector<16x32xf32>
    %145 = vector.extract_strided_slice %113 {offsets = [0, 8], sizes = [32, 8], strides = [1, 1]} : vector<32x32xf32> to vector<32x8xf32>
    %cst_65 = arith.constant dense<0.000000e+00> : vector<16x8xf32>
    %146 = tpu.matmul %144, %145, %cst_65 {dimension_numbers = #tpu.dot_dimension_numbers<[1], [0], [0], [1], [0, 0, 1, 1], [], []>} : vector<16x32xf32>, vector<32x8xf32>, vector<16x8xf32> -> vector<16x8xf32>
    %147 = vector.extract_strided_slice %140 {offsets = [32, 0], sizes = [16, 32], strides = [1, 1]} : vector<64x32xf32> to vector<16x32xf32>
    %148 = vector.extract_strided_slice %113 {offsets = [0, 16], sizes = [32, 8], strides = [1, 1]} : vector<32x32xf32> to vector<32x8xf32>
    %cst_66 = arith.constant dense<0.000000e+00> : vector<16x8xf32>
    %149 = tpu.matmul %147, %148, %cst_66 {dimension_numbers = #tpu.dot_dimension_numbers<[1], [0], [0], [1], [0, 0, 1, 1], [], []>} : vector<16x32xf32>, vector<32x8xf32>, vector<16x8xf32> -> vector<16x8xf32>
    %150 = vector.extract_strided_slice %140 {offsets = [48, 0], sizes = [16, 32], strides = [1, 1]} : vector<64x32xf32> to vector<16x32xf32>
    %151 = vector.extract_strided_slice %113 {offsets = [0, 24], sizes = [32, 8], strides = [1, 1]} : vector<32x32xf32> to vector<32x8xf32>
    %cst_67 = arith.constant dense<0.000000e+00> : vector<16x8xf32>
    %152 = tpu.matmul %150, %151, %cst_67 {dimension_numbers = #tpu.dot_dimension_numbers<[1], [0], [0], [1], [0, 0, 1, 1], [], []>} : vector<16x32xf32>, vector<32x8xf32>, vector<16x8xf32> -> vector<16x8xf32>
    %153 = tpu.concatenate %143, %146, %149, %152 in 1 : vector<16x8xf32>, vector<16x8xf32>, vector<16x8xf32>, vector<16x8xf32> -> vector<16x32xf32>
    %cst_68 = arith.constant dense<0.000000e+00> : vector<16x32xf32>
    %154 = tpu.matmul %153, %115, %cst_68 {dimension_numbers = #tpu.dot_dimension_numbers<[1], [0], [0], [1], [0, 0, 1, 1], [], []>} : vector<16x32xf32>, vector<32x32xf32>, vector<16x32xf32> -> vector<16x32xf32>
    %155 = vector.broadcast %116 : vector<1x32xf32> to vector<16x32xf32>
    %156 = arith.addf %154, %155 : vector<16x32xf32>
    %157 = arith.addf %77, %156 : vector<16x32xf32>
    %c0_69 = arith.constant 0 : index
    %c0_70 = arith.constant 0 : index
    %158 = vector.load %arg8[%c0_69, %c0_70] : memref<1x32xf32, #tpu.memory_space<vmem>>, vector<1x32xf32>
    %c0_71 = arith.constant 0 : index
    %c0_72 = arith.constant 0 : index
    %159 = vector.load %arg9[%c0_71, %c0_72] : memref<1x32xf32, #tpu.memory_space<vmem>>, vector<1x32xf32>
    %cst_73 = arith.constant dense<0.000000e+00> : vector<16xf32>
    %160 = vector.multi_reduction <add>, %157, %cst_73 [1] : vector<16x32xf32> to vector<16xf32>
    %161 = vector.shape_cast %160 : vector<16xf32> to vector<16x1xf32>
    %cst_74 = arith.constant 3.200000e+01 : f32
    %162 = vector.broadcast %cst_74 : f32 to vector<16x1xf32>
    %163 = arith.divf %161, %162 : vector<16x1xf32>
    %164 = vector.broadcast %163 : vector<16x1xf32> to vector<16x32xf32>
    %165 = arith.subf %157, %164 : vector<16x32xf32>
    %166 = arith.mulf %165, %165 : vector<16x32xf32>
    %cst_75 = arith.constant dense<0.000000e+00> : vector<16xf32>
    %167 = vector.multi_reduction <add>, %166, %cst_75 [1] : vector<16x32xf32> to vector<16xf32>
    %168 = vector.shape_cast %167 : vector<16xf32> to vector<16x1xf32>
    %cst_76 = arith.constant 3.200000e+01 : f32
    %169 = vector.broadcast %cst_76 : f32 to vector<16x1xf32>
    %170 = arith.divf %168, %169 : vector<16x1xf32>
    %171 = vector.broadcast %163 : vector<16x1xf32> to vector<16x32xf32>
    %172 = arith.subf %157, %171 : vector<16x32xf32>
    %cst_77 = arith.constant 9.99999997E-7 : f32
    %173 = vector.broadcast %cst_77 : f32 to vector<16x1xf32>
    %174 = arith.addf %170, %173 : vector<16x1xf32>
    %175 = math.rsqrt %174 : vector<16x1xf32>
    %176 = vector.broadcast %175 : vector<16x1xf32> to vector<16x32xf32>
    %177 = arith.mulf %172, %176 : vector<16x32xf32>
    %178 = vector.broadcast %158 : vector<1x32xf32> to vector<16x32xf32>
    %179 = arith.mulf %177, %178 : vector<16x32xf32>
    %180 = vector.broadcast %159 : vector<1x32xf32> to vector<16x32xf32>
    %181 = arith.addf %179, %180 : vector<16x32xf32>
    %c0_78 = arith.constant 0 : index
    %c0_79 = arith.constant 0 : index
    %182 = vector.load %arg20[%c0_78, %c0_79] : memref<32x128xf32, #tpu.memory_space<vmem>>, vector<32x128xf32>
    %cst_80 = arith.constant dense<0.000000e+00> : vector<16x128xf32>
    %183 = tpu.matmul %181, %182, %cst_80 {dimension_numbers = #tpu.dot_dimension_numbers<[1], [0], [0], [1], [0, 0, 1, 1], [], []>} : vector<16x32xf32>, vector<32x128xf32>, vector<16x128xf32> -> vector<16x128xf32>
    %c0_81 = arith.constant 0 : index
    %c0_82 = arith.constant 0 : index
    %184 = vector.load %arg21[%c0_81, %c0_82] : memref<1x128xf32, #tpu.memory_space<vmem>>, vector<1x128xf32>
    %185 = vector.broadcast %184 : vector<1x128xf32> to vector<16x128xf32>
    %186 = arith.addf %183, %185 : vector<16x128xf32>
    %cst_83 = arith.constant 0.000000e+00 : f32
    %187 = vector.broadcast %cst_83 : f32 to vector<16x128xf32>
    %188 = arith.maximumf %186, %187 : vector<16x128xf32>
    %c0_84 = arith.constant 0 : index
    %c0_85 = arith.constant 0 : index
    %189 = vector.load %arg22[%c0_84, %c0_85] : memref<128x32xf32, #tpu.memory_space<vmem>>, vector<128x32xf32>
    %cst_86 = arith.constant dense<0.000000e+00> : vector<16x32xf32>
    %190 = tpu.matmul %188, %189, %cst_86 {dimension_numbers = #tpu.dot_dimension_numbers<[1], [0], [0], [1], [0, 0, 1, 1], [], []>} : vector<16x128xf32>, vector<128x32xf32>, vector<16x32xf32> -> vector<16x32xf32>
    %191 = arith.addf %157, %190 : vector<16x32xf32>
    %c0_87 = arith.constant 0 : index
    %c0_88 = arith.constant 0 : index
    %192 = vector.load %arg23[%c0_87, %c0_88] : memref<1x32xf32, #tpu.memory_space<vmem>>, vector<1x32xf32>
    %193 = vector.broadcast %192 : vector<1x32xf32> to vector<16x32xf32>
    %194 = arith.addf %191, %193 : vector<16x32xf32>
    %c0_89 = arith.constant 0 : index
    %c0_90 = arith.constant 0 : index
    %195 = vector.load %arg24[%c0_89, %c0_90] : memref<16x32xf32, #tpu.memory_space<vmem>>, vector<16x32xf32>
    tpu.vector_store %arg24[%c0_89, %c0_90], %194 {strides = array<i32>} : memref<16x32xf32, #tpu.memory_space<vmem>>, vector<16x32xf32>,
    return
  }
}

</mosaic_0001>

<bundles_post_ra>
// kernel: decoder_layer.1
= control target key start
LH: loop header
LB: loop body
LE: loop exit
PB: predicated region body
PF: predicated region fallthrough
CT: control target
= control target key end

     0   :  { %s4242_s0 = inlined_call_operand.vmem [shape: f32[16,32], index: 0, kind: input, shape index: {}]   ;;  %s4243_s1 = inlined_call_operand.vmem [shape: f32[32,32], index: 1, kind: input, shape index: {}]   ;;  %s4244_s2 = inlined_call_operand.vmem [shape: f32[64,16], index: 2, kind: input, shape index: {}]   ;;  %s4245_s3 = inlined_call_operand.vmem [shape: f32[64,32], index: 3, kind: input, shape index: {}]   ;;  %s4246_s4 = inlined_call_operand.vmem [shape: f32[1,32], index: 4, kind: input, shape index: {}]   ;;  %s4247_s5 = inlined_call_operand.vmem [shape: f32[1,32], index: 5, kind: input, shape index: {}]   ;;  %s4248_s6 = inlined_call_operand.vmem [shape: f32[1,32], index: 6, kind: input, shape index: {}]   ;;  %s4249_s7 = inlined_call_operand.vmem [shape: f32[1,32], index: 7, kind: input, shape index: {}]   ;;  %s4250_s8 = inlined_call_operand.vmem [shape: f32[1,32], index: 8, kind: input, shape index: {}]   ;;  %s4251_s9 = inlined_call_operand.vmem [shape: f32[1,32], index: 9, kind: input, shape index: {}]   ;;  %s4252_s10 = inlined_call_operand.vmem [shape: f32[32,96], index: 10, kind: input, shape index: {}]   ;;  %s4253_s11 = inlined_call_operand.vmem [shape: f32[1,96], index: 11, kind: input, shape index: {}]   ;;  %s4254_s12 = inlined_call_operand.vmem [shape: f32[32,32], index: 12, kind: input, shape index: {}]   ;;  %s4255_s13 = inlined_call_operand.vmem [shape: f32[1,32], index: 13, kind: input, shape index: {}]   ;;  %s4256_s14 = inlined_call_operand.vmem [shape: f32[32,32], index: 14, kind: input, shape index: {}]   ;;  %s4257_s15 = inlined_call_operand.vmem [shape: f32[1,32], index: 15, kind: input, shape index: {}]   ;;  %s4258_s16 = inlined_call_operand.vmem [shape: f32[32,64], index: 16, kind: input, shape index: {}]   ;;  %s4259_s17 = inlined_call_operand.vmem [shape: f32[1,64], index: 17, kind: input, shape index: {}]   ;;  %s4260_s18 = inlined_call_operand.vmem [shape: f32[32,32], index: 18, kind: input, shape index: {}]   ;;  %s4261_s19 = inlined_call_operand.vmem [shape: f32[1,32], index: 19, kind: input, shape index: {}]   ;;  %s4262_s20 = inlined_call_operand.vmem [shape: f32[32,128], index: 20, kind: input, shape index: {}]   ;;  %s4263_s21 = inlined_call_operand.vmem [shape: f32[1,128], index: 21, kind: input, shape index: {}]   ;;  %s4264_s22 = inlined_call_operand.vmem [shape: f32[128,32], index: 22, kind: input, shape index: {}]   ;;  %s4265_s23 = inlined_call_operand.vmem [shape: f32[1,32], index: 23, kind: input, shape index: {}]   ;;  %s4266_s24 = inlined_call_operand.hbm [shape: f32[16,32], index: 24, kind: output, shape index: {}]  }
   0x1   :  { %4275 = sst [smem:[#allocation5_spill]] %s4242_s0 }
   0x2   :  { %4276 = sst [smem:[#allocation6_spill]] %s4243_s1 }
   0x3   :  { %4277 = sst [smem:[#allocation7_spill]] %s4244_s2 }
   0x4   :  { %4278 = sst [smem:[#allocation8_spill]] %s4245_s3 }
   0x5   :  { %4279 = sst [smem:[#allocation9_spill]] %s4246_s4 }
   0x6   :  { %4280 = sst [smem:[#allocation10_spill]] %s4247_s5 }
   0x7   :  { %4281 = sst [smem:[#allocation11_spill]] %s4248_s6 }
   0x8   :  { %4282 = sst [smem:[#allocation12_spill]] %s4249_s7 }
   0x9   :  { %4283 = sst [smem:[#allocation13_spill]] %s4250_s8 }
   0xa   :  { %s4284_s27 = sld [smem:[#allocation5_spill]]  ;;  %vm86_vm0 = vcmask 261120  }
  0x10   :  { %v3692_v0 = vld [vmem:[%s4284_s27] sm:$0xff]  ;;  %v3697_v1 = vld [vmem:[%s4284_s27 + $0x8] sm:$0xff] }
  0x11   :  { %29 = vsyncpa [#allocation3], 0  ;;  %v87_v2 = vsel %vm86_vm0, %v3692_v0, 0.0  ;;  %v90_v3 = vsel %vm86_vm0, %v3697_v1, 0.0  ;;  %v130_v14 = vld [vmem:[%s4252_s10] sm:$0xff]  ;;  %v131_v15 = vld [vmem:[%s4252_s10 + $0x8] sm:$0xff] }
  0x12   :  { %88 = vadd.xlane.f32.xlu0 %v87_v2  ;;  %v132_v16 = vld [vmem:[%s4252_s10 + $0x10] sm:$0xff]  ;;  %v3122_v17 = vpack.c.bf16 %v131_v15, %v130_v14  ;;  %v133_v18 = vld [vmem:[%s4252_s10 + $0x18] sm:$0xff]  ;;  %s4285_s5 = sld [smem:[#allocation9_spill]]  ;;  %s4286_s27 = sld [smem:[#allocation10_spill]]  ;;  %v2657_v36 = vld [vmem:[%s4253_s11] ss:$0 sm:$0xff] }
  0x13   :  { %v3126_v19 = vpack.c.bf16 %v133_v18, %v132_v16  ;;  %vm241_vm1 = vcmask 64512   ;;  %s3548_s2 = smov 88   ;;  %s3549_s29 = smov 96   ;;  %vm606_vm3 = vcmask 130048   ;;  %vm1071_vm4 = vcmask 195584  }
  0x14   :  { %3123 = vmatprep.subr.bf16.mxu0 %v3122_v17  ;;  %s3550_s0 = smov 80   ;;  %s3551_s11 = smov 120   ;;  %vm3749_vm2 = vmpackc.low %vm241_vm1, %vm241_vm1 }
  0x15   :  { %3125 = vmatpush3.bf16.msra.mxu0 %v3122_v17  ;;  %s3552_s7 = smov 72   ;;  %s3553_s30 = smov 112  }
  0x16   :  { %91 = vadd.xlane.f32.xlu0 %v90_v3  ;;  %3127 = vmatprep.subr.bf16.mxu0 %v3126_v19  ;;  %s3554_s3 = smov 104   ;;  %s4289_s4 = sld [smem:[#allocation7_spill]] }
  0x17   :  { %s3556_s28 = smov 48   ;;  %s3557_s6 = smov 64  }
  0x18   :  { %v2655_v27 = vld [vmem:[%s4285_s5] ss:$0 sm:$0xff]  ;;  %s3558_s25 = smov 40   ;;  %s4295_s8 = smov 24  }
  0x19   :  { %3129 = vmatpush3.bf16.msra.mxu0 %v3126_v19  ;;  %v2656_v29 = vld [vmem:[%s4286_s27] ss:$0 sm:$0xff] }
  0x1c   :  { %v223_v3 = vld [vmem:[%s4289_s4 + $0x8] sm:$0xff]  ;;  %v225_v17 = vld [vmem:[%s4289_s4 + $0x18] sm:$0xff] }
  0x9f   :  { %v89_v4 = vpop.xlane.xlu0 %88 }
  0xa0   :  { %v94_v5 = vmul.f32 0.03125, %v89_v4  ;;  %v222_v4 = vld [vmem:[%s4289_s4] sm:$0xff] }
  0xa2   :  { %v96_v6 = vsub.f32 %v3692_v0, %v94_v5 }
  0xa3   :  { %v92_v7 = vpop.xlane.xlu0 %91 }
  0xa4   :  { %v95_v8 = vmul.f32 0.03125, %v92_v7  ;;  %v98_v9 = vmul.f32 %v96_v6, %v96_v6 }
  0xa6   :  { %v97_v10 = vsub.f32 %v3697_v1, %v95_v8  ;;  %v100_v11 = vsel %vm86_vm0, %v98_v9, 0.0  ;;  %v227_v9 = vld [vmem:[%s4289_s4 + $0x28] sm:$0xff] }
  0xa7   :  { %101 = vadd.xlane.f32.xlu1 %v100_v11  ;;  %v226_v11 = vld [vmem:[%s4289_s4 + $0x20] sm:$0xff] }
  0xa8   :  { %v99_v12 = vmul.f32 %v97_v10, %v97_v10 }
  0xaa   :  { %v103_v13 = vsel %vm86_vm0, %v99_v12, 0.0 }
  0xab   :  { %104 = vadd.xlane.f32.xlu1 %v103_v13 }
 0x134   :  { %v102_v20 = vpop.xlane.xlu1 %101 }
 0x135   :  { %v106_v21 = vmul.f32 0.03125, %v102_v20 }
 0x137   :  { %v108_v22 = vadd.f32 1e-06, %v106_v21 }
 0x138   :  { %v105_v23 = vpop.xlane.xlu1 %104 }
 0x139   :  { %3448 = vrsqrt.f32 %v108_v22  ;;  %v107_v24 = vmul.f32 0.03125, %v105_v23  ;;  %v224_v22 = vld [vmem:[%s4289_s4 + $0x10] sm:$0xff] }
 0x13b   :  { %v109_v25 = vadd.f32 1e-06, %v107_v24 }
 0x13d   :  { %3450 = vrsqrt.f32 %v109_v25 }
 0x143   :  { %v3449_v26 = vpop.eup %3448 }
 0x144   :  { %v112_v28 = vmul.f32 %v3449_v26, %v96_v6  ;;  %v229_v26 = vld [vmem:[%s4289_s4 + $0x38] sm:$0xff] }
 0x146   :  { %v120_v30 = vmul.f32 %v2655_v27, %v112_v28 }
 0x147   :  { %v3451_v31 = vpop.eup %3450 }
 0x148   :  { %v113_v32 = vmul.f32 %v3451_v31, %v97_v10  ;;  %v128_v33 = vadd.f32 %v2656_v29, %v120_v30 }
 0x14a   :  { %v121_v34 = vmul.f32 %v2655_v27, %v113_v32  ;;  %2882 = vmatprep.mubr.msk.f32.mxu0 %vm86_vm0, %v128_v33  ;;  %v228_v27 = vld [vmem:[%s4289_s4 + $0x30] sm:$0xff]  ;;  %s3555_s4 = smov 56  }
 0x14c   :  { %v129_v35 = vadd.f32 %v2656_v29, %v121_v34 }
 0x14e   :  { %2883 = vmatmul.mubr.msk.f32.vlgmr.msra.gmra.mrb[0].mxu0 %vm86_vm0, %v129_v35 }
 0x221   :  { %v2884_v37 = vpop.f32.mrb[0].mxu0 }
 0x222   :  { %v219_v38 = vadd.f32 %v2884_v37, %v2657_v36  ;;  %v213_v39 = vpop.f32.mrb[1].mxu0 }
 0x223   :  { %v214_v40 = vadd.f32 %v2657_v36, %v213_v39 }
 0x225   :  { %2889 = vmatprep.mubr.msk.f32.mxu0 %vm241_vm1, %v214_v40  ;;  %v3731_v41 = vpack.i.bf16 %v219_v38, %v214_v40 }
 0x227   :  { %3344 = vrot.lane.b32.xlu1 %v3731_v41, %s3548_s2  ;;  %3339 = vrot.lane.b32.xlu0 %v3731_v41, %s3549_s29 }
 0x22b   :  { %3349 = vrot.lane.b32.xlu1 %v3731_v41, %s3550_s0  ;;  %325 = vrot.lane.b32.xlu0 %v214_v40, %s3551_s11 }
 0x22f   :  { %3354 = vrot.lane.b32.xlu1 %v3731_v41, %s3552_s7  ;;  %416 = vrot.lane.b32.xlu0 %v214_v40, %s3553_s30 }
 0x233   :  { %327 = vrot.lane.b32.xlu1 %v219_v38, %s3551_s11  ;;  %507 = vrot.lane.b32.xlu0 %v214_v40, %s3554_s3 }
 0x237   :  { %418 = vrot.lane.b32.xlu1 %v219_v38, %s3553_s30 }
 0x23b   :  { %509 = vrot.lane.b32.xlu1 %v219_v38, %s3554_s3 }
 0x299   :  { %v3345_v42 = vpop.permute.xlu1 %3344  ;;  %v3340_v43 = vpop.permute.xlu0 %3339 }
 0x29a   :  { %v3347_v44 = vunpack.i.h.bf16 %v3345_v42  ;;  %v3346_v45 = vunpack.i.l.bf16 %v3345_v42  ;;  %v3342_v46 = vunpack.i.h.bf16 %v3340_v43  ;;  %v3341_v47 = vunpack.i.l.bf16 %v3340_v43 }
 0x29c   :  { %v3130_v49 = vpack.c.bf16 %v3342_v46, %v3341_v47  ;;  %v3136_v52 = vpack.c.bf16 %v3347_v44, %v3346_v45 }
 0x29d   :  { %v3350_v50 = vpop.permute.xlu1 %3349  ;;  %v326_v51 = vpop.permute.xlu0 %325 }
 0x29e   :  { %v3352_v53 = vunpack.i.h.bf16 %v3350_v50  ;;  %v3351_v54 = vunpack.i.l.bf16 %v3350_v50  ;;  %3132 = vmatprep.subr.msk.bf16.mxu0 %vm3749_vm2, %v3130_v49 }
 0x29f   :  { %3135 = vmatpush3.bf16.xpose.msk.msra.mxu0 %vm3749_vm2, %v3130_v49 }
 0x2a0   :  { %3138 = vmatprep.subr.msk.bf16.mxu0 %vm3749_vm2, %v3136_v52  ;;  %v3142_v55 = vpack.c.bf16 %v3352_v53, %v3351_v54 }
 0x2a1   :  { %v3355_v56 = vpop.permute.xlu1 %3354  ;;  %v417_v57 = vpop.permute.xlu0 %416 }
 0x2a2   :  { %v3357_v58 = vunpack.i.h.bf16 %v3355_v56  ;;  %v3356_v59 = vunpack.i.l.bf16 %v3355_v56  ;;  %3144 = vmatprep.subr.msk.bf16.mxu1 %vm3749_vm2, %v3142_v55  ;;  %2903 = vmatprep.mubr.msk.f32.mxu1 %vm241_vm1, %v417_v57 }
 0x2a3   :  { %3147 = vmatpush3.bf16.xpose.msk.msra.mxu1 %vm3749_vm2, %v3142_v55 }
 0x2a4   :  { %v3148_v61 = vpack.c.bf16 %v3357_v58, %v3356_v59 }
 0x2a5   :  { %v328_v60 = vpop.permute.xlu1 %327  ;;  %v508_v63 = vpop.permute.xlu0 %507 }
 0x2a6   :  { %2890 = vmatmul.mubr.msk.f32.vlgmr.msra.gmra.mrb[2].mxu0 %vm241_vm1, %v219_v38 }
 0x2a7   :  { %3141 = vmatpush3.bf16.xpose.msk.msra.mxu0 %vm3749_vm2, %v3136_v52  ;;  %2896 = vmatprep.mubr.msk.f32.mxu0 %vm241_vm1, %v326_v51 }
 0x2a8   :  { %3150 = vmatprep.subr.msk.bf16.mxu0 %vm3749_vm2, %v3148_v61 }
 0x2a9   :  { %v419_v62 = vpop.permute.xlu1 %418 }
 0x2aa   :  { %2904 = vmatmul.mubr.msk.f32.vlgmr.msra.gmra.mrb[0].mxu1 %vm241_vm1, %v419_v62 }
 0x2ad   :  { %v510_v2 = vpop.permute.xlu1 %509 }
 0x2ae   :  { %2897 = vmatmul.mubr.msk.f32.vlgmr.msra.gmra.mrb[4].mxu0 %vm241_vm1, %v328_v60 }
 0x2af   :  { %3153 = vmatpush3.bf16.xpose.msk.msra.mxu0 %vm3749_vm2, %v3148_v61  ;;  %2910 = vmatprep.mubr.msk.f32.mxu0 %vm241_vm1, %v508_v63 }
 0x2b6   :  { %2911 = vmatmul.mubr.msk.f32.vlgmr.msra.gmra.mrb[6].mxu0 %vm241_vm1, %v510_v2 }
 0x379   :  { %v2891_v5 = vpop.f32.mrb[2].mxu0 }
 0x37a   :  { %v599_v6 = vadd.f32 %v2891_v5, %v223_v3  ;;  %v316_v7 = vpop.f32.mrb[3].mxu0 }
 0x37b   :  { %v598_v8 = vadd.f32 %v316_v7, %v222_v4 }
 0x37c   :  { %v610_v10 = vsel %vm606_vm3, %v599_v6, -inf }
 0x37d   :  { %v2905_v12 = vpop.f32.mrb[0].mxu1  ;;  %611 = vmax.xlane.f32.xlu1 %v610_v10  ;;  %v607_v13 = vsel %vm606_vm3, %v598_v8, -inf }
 0x37e   :  { %v603_v14 = vadd.f32 %v2905_v12, %v227_v9  ;;  %v498_v15 = vpop.f32.mrb[1].mxu1  ;;  %608 = vmax.xlane.f32.xlu0 %v607_v13 }
 0x37f   :  { %v602_v16 = vadd.f32 %v498_v15, %v226_v11 }
 0x380   :  { %v622_v18 = vsel %vm606_vm3, %v603_v14, -inf }
 0x381   :  { %623 = vmax.xlane.f32.xlu1 %v622_v18  ;;  %v2898_v19 = vpop.f32.mrb[4].mxu0  ;;  %v619_v20 = vsel %vm606_vm3, %v602_v16, -inf }
 0x382   :  { %v601_v21 = vadd.f32 %v2898_v19, %v225_v17  ;;  %620 = vmax.xlane.f32.xlu0 %v619_v20  ;;  %v407_v23 = vpop.f32.mrb[5].mxu0 }
 0x383   :  { %v600_v25 = vadd.f32 %v407_v23, %v224_v22 }
 0x384   :  { %v616_v24 = vsel %vm606_vm3, %v601_v21, -inf }
 0x385   :  { %v613_v29 = vsel %vm606_vm3, %v600_v25, -inf }
 0x386   :  { %617 = vmax.xlane.f32.xlu0 %v616_v24 }
 0x389   :  { %v2912_v28 = vpop.f32.mrb[6].mxu0 }
 0x38a   :  { %v605_v30 = vadd.f32 %v2912_v28, %v229_v26  ;;  %614 = vmax.xlane.f32.xlu0 %v613_v29  ;;  %v589_v31 = vpop.f32.mrb[7].mxu0 }
 0x38b   :  { %v604_v32 = vadd.f32 %v589_v31, %v228_v27 }
 0x38c   :  { %v628_v33 = vsel %vm606_vm3, %v605_v30, -inf }
 0x38d   :  { %629 = vmax.xlane.f32.xlu1 %v628_v33  ;;  %v625_v34 = vsel %vm606_vm3, %v604_v32, -inf }
 0x38e   :  { %626 = vmax.xlane.f32.xlu0 %v625_v34 }
 0x40a   :  { %v612_v35 = vpop.xlane.xlu1 %611 }
 0x40b   :  { %v632_v36 = vsub.f32 %v599_v6, %v612_v35  ;;  %v609_v37 = vpop.xlane.xlu0 %608 }
 0x40c   :  { %v631_v38 = vsub.f32 %v598_v8, %v609_v37 }
 0x40d   :  { %v641_v39 = vmul.f32 1.442695, %v632_v36 }
 0x40e   :  { %v639_v40 = vmul.f32 1.442695, %v631_v38  ;;  %v624_v42 = vpop.xlane.xlu1 %623 }
 0x40f   :  { %3452 = vpow2.f32 %v641_v39  ;;  %v636_v43 = vsub.f32 %v603_v14, %v624_v42  ;;  %v621_v44 = vpop.xlane.xlu0 %620 }
 0x410   :  { %3454 = vpow2.f32 %v639_v40  ;;  %v635_v45 = vsub.f32 %v602_v16, %v621_v44 }
 0x411   :  { %v649_v46 = vmul.f32 1.442695, %v636_v43 }
 0x412   :  { %v647_v47 = vmul.f32 1.442695, %v635_v45 }
 0x413   :  { %3456 = vpow2.f32 %v649_v46  ;;  %v618_v49 = vpop.xlane.xlu0 %617 }
 0x414   :  { %3458 = vpow2.f32 %v647_v47  ;;  %v634_v50 = vsub.f32 %v601_v21, %v618_v49 }
 0x416   :  { %v645_v51 = vmul.f32 1.442695, %v634_v50 }
 0x417   :  { %v615_v52 = vpop.xlane.xlu0 %614 }
 0x418   :  { %3460 = vpow2.f32 %v645_v51  ;;  %v633_v53 = vsub.f32 %v600_v25, %v615_v52 }
 0x419   :  { %v3808_v54 = vpop.eup %3452 }
 0x41a   :  { %v3455_v55 = vpop.eup %3454  ;;  %v643_v56 = vmul.f32 1.442695, %v633_v53  ;;  %v630_v57 = vpop.xlane.xlu1 %629  ;;  %v658_v58 = vsel %vm606_vm3, %v3808_v54, 0.0 }
 0x41b   :  { %v638_v59 = vsub.f32 %v605_v30, %v630_v57  ;;  %659 = vadd.xlane.f32.xlu1 %v658_v58  ;;  %v627_v60 = vpop.xlane.xlu0 %626  ;;  %v655_v61 = vsel %vm606_vm3, %v3455_v55, 0.0  ;;  %v231_v57 = vld [vmem:[%s4254_s12 + $0x8] sm:$0xff] }
 0x41c   :  { %3462 = vpow2.f32 %v643_v56  ;;  %v637_v62 = vsub.f32 %v604_v32, %v627_v60  ;;  %656 = vadd.xlane.f32.xlu0 %v655_v61  ;;  %v230_v56 = vld [vmem:[%s4254_s12] sm:$0xff]  ;;  %v233_v60 = vld [vmem:[%s4254_s12 + $0x18] sm:$0xff] }
 0x41d   :  { %v3813_v63 = vpop.eup %3456  ;;  %v653_v2 = vmul.f32 1.442695, %v638_v59  ;;  %v3170_v58 = vpack.c.bf16 %v231_v57, %v230_v56  ;;  %v232_v59 = vld [vmem:[%s4254_s12 + $0x10] sm:$0xff]  ;;  %s4271_s12 = smov 24  }
 0x41e   :  { %v3815_v3 = vpop.eup %3458  ;;  %v651_v4 = vmul.f32 1.442695, %v637_v62  ;;  %v670_v5 = vsel %vm606_vm3, %v3813_v63, 0.0  ;;  %v3174_v61 = vpack.c.bf16 %v233_v60, %v232_v59 }
 0x41f   :  { %3464 = vpow2.f32 %v653_v2  ;;  %671 = vadd.xlane.f32.xlu1 %v670_v5  ;;  %v667_v6 = vsel %vm606_vm3, %v3815_v3, 0.0 }
 0x420   :  { %3466 = vpow2.f32 %v651_v4  ;;  %668 = vadd.xlane.f32.xlu0 %v667_v6 }
 0x422   :  { %v3461_v7 = vpop.eup %3460 }
 0x423   :  { %v664_v8 = vsel %vm606_vm3, %v3461_v7, 0.0 }
 0x424   :  { %665 = vadd.xlane.f32.xlu1 %v664_v8 }
 0x426   :  { %v3463_v9 = vpop.eup %3462 }
 0x427   :  { %v661_v10 = vsel %vm606_vm3, %v3463_v9, 0.0 }
 0x428   :  { %662 = vadd.xlane.f32.xlu0 %v661_v10 }
 0x429   :  { %v3823_v11 = vpop.eup %3464 }
 0x42a   :  { %v3825_v12 = vpop.eup %3466  ;;  %v676_v13 = vsel %vm606_vm3, %v3823_v11, 0.0 }
 0x42b   :  { %677 = vadd.xlane.f32.xlu1 %v676_v13  ;;  %v673_v14 = vsel %vm606_vm3, %v3825_v12, 0.0 }
 0x42c   :  { %674 = vadd.xlane.f32.xlu0 %v673_v14 }
 0x43c   :  { %3364 = vrot.lane.b32.xlu1 %v3731_v41, %s3555_s4 }
 0x440   :  { %3369 = vrot.lane.b32.xlu1 %v3731_v41, %s3556_s28 }
 0x442   :  { %3359 = vrot.lane.b32.xlu0 %v3731_v41, %s3557_s6  ;;  %s4273_s6 = smov 16  }
 0x444   :  { %3374 = vrot.lane.b32.xlu1 %v3731_v41, %s3558_s25  ;;  %s3560_s25 = smov 8  }
 0x4a8   :  { %v660_v15 = vpop.xlane.xlu1 %659 }
 0x4a9   :  { %v657_v16 = vpop.xlane.xlu0 %656 }
 0x4aa   :  { %3468 = vrcp.f32 %v657_v16 }
 0x4ac   :  { %v672_v17 = vpop.xlane.xlu1 %671 }
 0x4ad   :  { %v669_v18 = vpop.xlane.xlu0 %668 }
 0x4b1   :  { %v666_v19 = vpop.xlane.xlu1 %665 }
 0x4b2   :  { %3470 = vrcp.f32 %v666_v19 }
 0x4b4   :  { %v3469_v20 = vpop.eup %3468 }
 0x4b5   :  { %v663_v21 = vpop.xlane.xlu0 %662  ;;  %v687_v22 = vmul.f32 %v3469_v20, %v3455_v55  ;;  %v2684_v20 = vld [vmem:[%s4255_s13] ss:$0 sm:$0xff] }
 0x4b6   :  { %3472 = vrcp.f32 %v663_v21 }
 0x4b7   :  { %3474 = vrcp.f32 %v660_v15  ;;  %2917 = vmatprep.mubr.msk.f32.mxu0 %vm606_vm3, %v687_v22 }
 0x4b8   :  { %3476 = vrcp.f32 %v669_v18  ;;  %v678_v23 = vpop.xlane.xlu1 %677 }
 0x4b9   :  { %v675_v24 = vpop.xlane.xlu0 %674 }
 0x4ba   :  { %3478 = vrcp.f32 %v675_v24 }
 0x4bb   :  { %3480 = vrcp.f32 %v672_v17 }
 0x4bc   :  { %v3365_v41 = vpop.permute.xlu1 %3364  ;;  %3482 = vrcp.f32 %v678_v23  ;;  %v3471_v30 = vpop.eup %3470 }
 0x4bd   :  { %v3367_v25 = vunpack.i.h.bf16 %v3365_v41  ;;  %v3366_v26 = vunpack.i.l.bf16 %v3365_v41  ;;  %v3360_v27 = vpop.permute.xlu0 %3359  ;;  %v690_v40 = vmul.f32 %v3471_v30, %v3461_v7  ;;  %v1302_v30 = vld [vmem:[%s4258_s16 + $0x18] sm:$0xff] }
 0x4be   :  { %v3362_v28 = vunpack.i.h.bf16 %v3360_v27  ;;  %v3361_v29 = vunpack.i.l.bf16 %v3360_v27 }
 0x4bf   :  { %v3158_v31 = vpack.c.bf16 %v3367_v25, %v3366_v26 }
 0x4c0   :  { %v3473_v32 = vpop.eup %3472  ;;  %v3154_v33 = vpack.c.bf16 %v3362_v28, %v3361_v29  ;;  %v3370_v34 = vpop.permute.xlu1 %3369  ;;  %v1299_v28 = vld [vmem:[%s4258_s16] sm:$0xff] }
 0x4c1   :  { %v3475_v35 = vpop.eup %3474  ;;  %v3372_v36 = vunpack.i.h.bf16 %v3370_v34  ;;  %v3371_v37 = vunpack.i.l.bf16 %v3370_v34  ;;  %3159 = vmatprep.subr.bf16.mxu1 %v3158_v31  ;;  %v689_v38 = vmul.f32 %v3473_v32, %v3463_v9 }
 0x4c2   :  { %v3477_v39 = vpop.eup %3476  ;;  %3155 = vmatprep.subr.bf16.mxu0 %v3154_v33  ;;  %3161 = vmatpush3.bf16.msra.mxu1 %v3158_v31  ;;  %v688_v44 = vmul.f32 %v3475_v35, %v3808_v54 }
 0x4c3   :  { %v3162_v42 = vpack.c.bf16 %v3372_v36, %v3371_v37  ;;  %3157 = vmatpush3.bf16.msra.mxu0 %v3154_v33  ;;  %2924 = vmatprep.mubr.msk.f32.mxu1 %vm606_vm3, %v689_v38  ;;  %v691_v50 = vmul.f32 %v3477_v39, %v3815_v3 }
 0x4c4   :  { %v3479_v43 = vpop.eup %3478  ;;  %v3375_v45 = vpop.permute.xlu1 %3374 }
 0x4c5   :  { %v3481_v46 = vpop.eup %3480  ;;  %v3377_v47 = vunpack.i.h.bf16 %v3375_v45  ;;  %v3376_v49 = vunpack.i.l.bf16 %v3375_v45  ;;  %2925 = vmatmul.mubr.msk.f32.vlgmr.msra.gmra.mrb[2].mxu1 %vm606_vm3, %v690_v40  ;;  %3163 = vmatprep.subr.bf16.mxu0 %v3162_v42  ;;  %v693_v51 = vmul.f32 %v3479_v43, %v3825_v12 }
 0x4c6   :  { %2918 = vmatmul.mubr.msk.f32.vlgmr.msra.gmra.mrb[8].mxu0 %vm606_vm3, %v688_v44  ;;  %v3483_v53 = vpop.eup %3482  ;;  %v692_v54 = vmul.f32 %v3481_v46, %v3813_v63 }
 0x4c7   :  { %v3166_v52 = vpack.c.bf16 %v3377_v47, %v3376_v49  ;;  %3165 = vmatpush3.bf16.msra.mxu0 %v3162_v42  ;;  %2931 = vmatprep.mubr.msk.f32.mxu0 %vm606_vm3, %v691_v50  ;;  %v694_v55 = vmul.f32 %v3483_v53, %v3823_v11  ;;  %v1207_v47 = vld [vmem:[%s4256_s14] sm:$0xff]  ;;  %v1208_v49 = vld [vmem:[%s4256_s14 + $0x8] sm:$0xff] }
 0x4c8   :  { %2938 = vmatprep.mubr.msk.f32.mxu1 %vm606_vm3, %v693_v51  ;;  %3171 = vmatprep.subr.bf16.mxu0 %v3170_v58  ;;  %v3178_v50 = vpack.c.bf16 %v1208_v49, %v1207_v47  ;;  %v1209_v51 = vld [vmem:[%s4256_s14 + $0x10] sm:$0xff] }
 0x4c9   :  { %3167 = vmatprep.subr.bf16.mxu1 %v3166_v52 }
 0x4ca   :  { %2932 = vmatmul.mubr.msk.f32.vlgmr.msra.gmra.mrb[10].mxu0 %vm606_vm3, %v692_v54  ;;  %3169 = vmatpush3.bf16.msra.mxu1 %v3166_v52  ;;  %v1210_v52 = vld [vmem:[%s4256_s14 + $0x18] sm:$0xff]  ;;  %v2692_v54 = vld [vmem:[%s4259_s17] ss:$0 sm:$0xff] }
 0x4cb   :  { %3173 = vmatpush3.bf16.msra.mxu0 %v3170_v58  ;;  %3179 = vmatprep.subr.bf16.mxu1 %v3178_v50  ;;  %v3182_v53 = vpack.c.bf16 %v1210_v52, %v1209_v51 }
 0x4cc   :  { %3175 = vmatprep.subr.bf16.mxu0 %v3174_v61 }
 0x4cd   :  { %2939 = vmatmul.mubr.msk.f32.vlgmr.msra.gmra.mrb[4].mxu1 %vm606_vm3, %v694_v55 }
 0x4ce   :  { %3181 = vmatpush3.bf16.msra.mxu1 %v3178_v50 }
 0x4cf   :  { %3177 = vmatpush3.bf16.msra.mxu0 %v3174_v61  ;;  %3183 = vmatprep.subr.bf16.mxu1 %v3182_v53 }
 0x4d2   :  { %3185 = vmatpush3.bf16.msra.mxu1 %v3182_v53 }
 0x598   :  { %v2926_v62 = vpop.f32.mrb[2].mxu1 }
 0x599   :  { %v2919_v63 = vpop.f32.mrb[8].mxu0  ;;  %v860_v2 = vpop.f32.mrb[3].mxu1 }
 0x59a   :  { %v773_v3 = vpop.f32.mrb[9].mxu0 }
 0x59d   :  { %v2933_v4 = vpop.f32.mrb[10].mxu0 }
 0x59e   :  { %1055 = vrot.lane.b32.xlu1 %v2933_v4, %s4273_s6  ;;  %v947_v5 = vpop.f32.mrb[11].mxu0 }
 0x59f   :  { %1053 = vrot.lane.b32.xlu0 %v947_v5, %s4273_s6  ;;  %s4290_s6 = sld [smem:[#allocation6_spill]] }
 0x5a0   :  { %v2940_v6 = vpop.f32.mrb[4].mxu1 }
 0x5a1   :  { %v1034_v7 = vpop.f32.mrb[5].mxu1 }
 0x5a2   :  { %1047 = vrot.lane.b32.xlu1 %v2926_v62, %s3560_s25 }
 0x5a3   :  { %1045 = vrot.lane.b32.xlu0 %v860_v2, %s3560_s25 }
 0x5a5   :  { %v80_v31 = vld [vmem:[%s4290_s6] sm:$0xff]  ;;  %v81_v33 = vld [vmem:[%s4290_s6 + $0x8] sm:$0xff]  ;;  %v82_v34 = vld [vmem:[%s4290_s6 + $0x10] sm:$0xff] }
 0x5a6   :  { %1063 = vrot.lane.b32.xlu1 %v2940_v6, %s4271_s12  ;;  %v83_v35 = vld [vmem:[%s4290_s6 + $0x18] sm:$0xff]  ;;  %s4292_s6 = sld [smem:[#allocation12_spill]] }
 0x5a7   :  { %1061 = vrot.lane.b32.xlu0 %v1034_v7, %s4271_s12 }
 0x610   :  { %v1056_v8 = vpop.permute.xlu1 %1055 }
 0x611   :  { %v1054_v9 = vpop.permute.xlu0 %1053 }
 0x614   :  { %v1048_v10 = vpop.permute.xlu1 %1047 }
 0x615   :  { %v1046_v11 = vpop.permute.xlu0 %1045  ;;  %v1068_v13 = vsel %vm241_vm1, %v2919_v63, %v1048_v10 }
 0x616   :  { %v1067_v12 = vsel %vm241_vm1, %v773_v3, %v1046_v11  ;;  %v1070_v17 = vsel %vm606_vm3, %v1068_v13, %v1056_v8  ;;  %v2688_v13 = vld [vmem:[%s4292_s6] ss:$0 sm:$0xff] }
 0x617   :  { %v1069_v15 = vsel %vm606_vm3, %v1067_v12, %v1054_v9 }
 0x618   :  { %v1064_v14 = vpop.permute.xlu1 %1063 }
 0x619   :  { %v1062_v16 = vpop.permute.xlu0 %1061  ;;  %v1073_v19 = vsel %vm1071_vm4, %v1070_v17, %v1064_v14 }
 0x61a   :  { %v1072_v18 = vsel %vm1071_vm4, %v1069_v15, %v1062_v16 }
 0x61b   :  { %2949 = vmatprep.mubr.msk.f32.mxu0 %vm86_vm0, %v1072_v18 }
 0x61c   :  { %2950 = vmatmul.mubr.msk.f32.vlgmr.msra.gmra.mrb[12].mxu0 %vm86_vm0, %v1073_v19 }
 0x61d   :  { %2971 = vmatprep.mubr.msk.f32.mxu0 %vm86_vm0, %v80_v31 }
 0x6ef   :  { %v2951_v21 = vpop.f32.mrb[12].mxu0 }
 0x6f0   :  { %v1158_v22 = vadd.f32 %v2951_v21, %v2684_v20  ;;  %v1152_v23 = vpop.f32.mrb[13].mxu0 }
 0x6f1   :  { %v1153_v24 = vadd.f32 %v2684_v20, %v1152_v23 }
 0x6f2   :  { %v3878_v41 = vadd.f32 %v1158_v22, %v3697_v1  ;;  %v1300_v1 = vld [vmem:[%s4258_s16 + $0x8] sm:$0xff] }
 0x6f3   :  { %v3881_v25 = vadd.f32 %v1153_v24, %v3692_v0  ;;  %v1301_v0 = vld [vmem:[%s4258_s16 + $0x10] sm:$0xff]  ;;  %v3186_v29 = vpack.c.bf16 %v1300_v1, %v1299_v28  ;;  %s4291_s16 = sld [smem:[#allocation11_spill]] }
 0x6f4   :  { %v1168_v26 = vsel %vm86_vm0, %v3878_v41, 0.0  ;;  %v3190_v32 = vpack.c.bf16 %v1302_v30, %v1301_v0 }
 0x6f5   :  { %1169 = vadd.xlane.f32.xlu1 %v1168_v26  ;;  %v1165_v27 = vsel %vm86_vm0, %v3881_v25, 0.0  ;;  %3187 = vmatprep.subr.bf16.mxu0 %v3186_v29 }
 0x6f6   :  { %1166 = vadd.xlane.f32.xlu0 %v1165_v27  ;;  %3189 = vmatpush3.bf16.msra.mxu0 %v3186_v29 }
 0x6f7   :  { %3191 = vmatprep.subr.bf16.mxu0 %v3190_v32 }
 0x6f9   :  { %v2687_v11 = vld [vmem:[%s4291_s16] ss:$0 sm:$0xff] }
 0x6fa   :  { %3193 = vmatpush3.bf16.msra.mxu0 %v3190_v32 }
 0x6fd   :  { %2972 = vmatmul.mubr.msk.f32.vlgmr.msra.gmra.mrb[14].mxu0 %vm86_vm0, %v81_v33 }
 0x6fe   :  { %2974 = vmatprep.mubr.msk.f32.mxu0 %vm86_vm0, %v82_v34 }
 0x701   :  { %2975 = vmatmul.mubr.msk.f32.gmra.mrb[16].mxu0 %vm86_vm0, %v83_v35 }
 0x782   :  { %v1170_v36 = vpop.xlane.xlu1 %1169 }
 0x783   :  { %v1172_v37 = vmul.f32 0.03125, %v1170_v36  ;;  %v1167_v38 = vpop.xlane.xlu0 %1166  ;;  %v2689_v36 = vld [vmem:[%s4257_s15] ss:$0 sm:$0xff] }
 0x784   :  { %v1171_v39 = vmul.f32 0.03125, %v1167_v38 }
 0x785   :  { %v1174_v40 = vsub.f32 %v3878_v41, %v1172_v37 }
 0x786   :  { %v1173_v42 = vsub.f32 %v3881_v25, %v1171_v39 }
 0x787   :  { %v1176_v45 = vmul.f32 %v1174_v40, %v1174_v40 }
 0x788   :  { %v1175_v43 = vmul.f32 %v1173_v42, %v1173_v42 }
 0x789   :  { %v1180_v46 = vsel %vm86_vm0, %v1176_v45, 0.0 }
 0x78a   :  { %v1177_v44 = vsel %vm86_vm0, %v1175_v43, 0.0 }
 0x78b   :  { %1178 = vadd.xlane.f32.xlu0 %v1177_v44 }
 0x78f   :  { %1181 = vadd.xlane.f32.xlu0 %v1180_v46 }
 0x7d0   :  { %v2973_v55 = vpop.f32.mrb[14].mxu0 }
 0x7d1   :  { %v1394_v56 = vadd.f32 %v2973_v55, %v2692_v54  ;;  %v1388_v57 = vpop.f32.mrb[15].mxu0 }
 0x7d2   :  { %v1389_v58 = vadd.f32 %v2692_v54, %v1388_v57 }
 0x7d4   :  { %v2976_v59 = vpop.f32.mrb[16].mxu0  ;;  %v3934_v60 = vpack.i.bf16 %v1394_v56, %v1389_v58  ;;  %v3194_v61 = vpack.c.bf16 %v1394_v56, %v1389_v58 }
 0x7d5   :  { %v1404_v62 = vadd.f32 %v2976_v59, %v2692_v54  ;;  %v1398_v63 = vpop.f32.mrb[17].mxu0 }
 0x7d6   :  { %v1399_v2 = vadd.f32 %v2692_v54, %v1398_v63  ;;  %3379 = vrot.lane.b32.xlu0 %v3934_v60, %s3551_s11  ;;  %3196 = vmatprep.subr.msk.bf16.mxu1 %vm3749_vm2, %v3194_v61 }
 0x7d8   :  { %v3940_v3 = vpack.i.bf16 %v1404_v62, %v1399_v2  ;;  %v3200_v20 = vpack.c.bf16 %v1404_v62, %v1399_v2 }
 0x7da   :  { %3384 = vrot.lane.b32.xlu1 %v3940_v3, %s3551_s11 }
 0x7de   :  { %3389 = vrot.lane.b32.xlu1 %v3934_v60, %s3553_s30 }
 0x7e2   :  { %3394 = vrot.lane.b32.xlu1 %v3934_v60, %s3554_s3 }
 0x818   :  { %v1179_v4 = vpop.xlane.xlu0 %1178 }
 0x819   :  { %v1183_v5 = vmul.f32 0.03125, %v1179_v4 }
 0x81b   :  { %v1185_v6 = vadd.f32 1e-06, %v1183_v5 }
 0x81c   :  { %v1182_v7 = vpop.xlane.xlu0 %1181 }
 0x81d   :  { %3484 = vrsqrt.f32 %v1185_v6  ;;  %v1184_v8 = vmul.f32 0.03125, %v1182_v7 }
 0x81f   :  { %v1186_v9 = vadd.f32 1e-06, %v1184_v8 }
 0x821   :  { %3486 = vrsqrt.f32 %v1186_v9 }
 0x827   :  { %v3485_v10 = vpop.eup %3484 }
 0x828   :  { %v1189_v12 = vmul.f32 %v3485_v10, %v1173_v42 }
 0x82a   :  { %v1197_v14 = vmul.f32 %v2687_v11, %v1189_v12 }
 0x82b   :  { %v3487_v15 = vpop.eup %3486 }
 0x82c   :  { %v1190_v16 = vmul.f32 %v3487_v15, %v1174_v40  ;;  %v1205_v17 = vadd.f32 %v2688_v13, %v1197_v14 }
 0x82e   :  { %v1198_v18 = vmul.f32 %v2687_v11, %v1190_v16  ;;  %2960 = vmatprep.mubr.msk.f32.mxu1 %vm86_vm0, %v1205_v17 }
 0x830   :  { %v1206_v19 = vadd.f32 %v2688_v13, %v1198_v18 }
 0x832   :  { %2961 = vmatmul.mubr.msk.f32.vlgmr.msra.gmra.mrb[6].mxu1 %vm86_vm0, %v1206_v19 }
 0x833   :  { %3199 = vmatpush3.bf16.xpose.msk.msra.mxu1 %vm3749_vm2, %v3194_v61 }
 0x834   :  { %3202 = vmatprep.subr.msk.bf16.mxu1 %vm3749_vm2, %v3200_v20 }
 0x83b   :  { %3205 = vmatpush3.bf16.xpose.msk.msra.mxu1 %vm3749_vm2, %v3200_v20 }
 0x848   :  { %v3380_v21 = vpop.permute.xlu0 %3379 }
 0x849   :  { %v3382_v23 = vunpack.i.h.bf16 %v3380_v21  ;;  %v3381_v24 = vunpack.i.l.bf16 %v3380_v21 }
 0x84b   :  { %v3206_v28 = vpack.c.bf16 %v3382_v23, %v3381_v24 }
 0x84c   :  { %v3385_v22 = vpop.permute.xlu1 %3384 }
 0x84d   :  { %v3387_v26 = vunpack.i.h.bf16 %v3385_v22  ;;  %v3386_v27 = vunpack.i.l.bf16 %v3385_v22  ;;  %3208 = vmatprep.subr.msk.bf16.mxu0 %vm3749_vm2, %v3206_v28 }
 0x84e   :  { %3211 = vmatpush3.bf16.xpose.msk.msra.mxu0 %vm3749_vm2, %v3206_v28 }
 0x84f   :  { %v3212_v1 = vpack.c.bf16 %v3387_v26, %v3386_v27 }
 0x850   :  { %v3390_v0 = vpop.permute.xlu1 %3389 }
 0x851   :  { %v3392_v29 = vunpack.i.h.bf16 %v3390_v0  ;;  %v3391_v30 = vunpack.i.l.bf16 %v3390_v0  ;;  %3214 = vmatprep.subr.msk.bf16.mxu0 %vm3749_vm2, %v3212_v1 }
 0x853   :  { %v3218_v31 = vpack.c.bf16 %v3392_v29, %v3391_v30 }
 0x854   :  { %v3395_v32 = vpop.permute.xlu1 %3394 }
 0x855   :  { %v3397_v33 = vunpack.i.h.bf16 %v3395_v32  ;;  %v3396_v34 = vunpack.i.l.bf16 %v3395_v32  ;;  %3220 = vmatprep.subr.msk.bf16.mxu1 %vm3749_vm2, %v3218_v31 }
 0x856   :  { %3217 = vmatpush3.bf16.xpose.msk.msra.mxu0 %vm3749_vm2, %v3212_v1 }
 0x857   :  { %v3230_v35 = vpack.c.bf16 %v3397_v33, %v3396_v34 }
 0x859   :  { %3232 = vmatprep.subr.msk.bf16.mxu0 %vm3749_vm2, %v3230_v35 }
 0x905   :  { %v2962_v37 = vpop.f32.mrb[6].mxu1 }
 0x906   :  { %v1296_v38 = vadd.f32 %v2962_v37, %v2689_v36  ;;  %v1290_v39 = vpop.f32.mrb[7].mxu1 }
 0x907   :  { %v1291_v40 = vadd.f32 %v2689_v36, %v1290_v39 }
 0x908   :  { %1515 = vrot.lane.b32.xlu1 %v1296_v38, %s3551_s11 }
 0x909   :  { %1513 = vrot.lane.b32.xlu0 %v1291_v40, %s3551_s11  ;;  %2985 = vmatprep.mubr.msk.f32.mxu1 %vm241_vm1, %v1291_v40 }
 0x90a   :  { %2986 = vmatmul.mubr.msk.f32.vlgmr.msra.gmra.mrb[8].mxu1 %vm241_vm1, %v1296_v38 }
 0x90b   :  { %3223 = vmatpush3.bf16.xpose.msk.msra.mxu1 %vm3749_vm2, %v3218_v31 }
 0x90c   :  { %3404 = vrot.lane.b32.xlu1 %v3940_v3, %s3554_s3 }
 0x90d   :  { %3399 = vrot.lane.b32.xlu0 %v3940_v3, %s3553_s30 }
 0x910   :  { %1614 = vrot.lane.b32.xlu1 %v1296_v38, %s3553_s30 }
 0x911   :  { %1612 = vrot.lane.b32.xlu0 %v1291_v40, %s3553_s30  ;;  %s4293_s30 = sld [smem:[#allocation8_spill]] }
 0x914   :  { %1713 = vrot.lane.b32.xlu1 %v1296_v38, %s3554_s3 }
 0x915   :  { %1711 = vrot.lane.b32.xlu0 %v1291_v40, %s3554_s3  ;;  %s4294_s3 = smov 16  }
 0x917   :  { %v1408_v57 = vld [vmem:[%s4293_s30 + $0x8] sm:$0xff]  ;;  %v1407_v58 = vld [vmem:[%s4293_s30] sm:$0xff]  ;;  %v1410_v4 = vld [vmem:[%s4293_s30 + $0x18] sm:$0xff] }
 0x918   :  { %v1409_v6 = vld [vmem:[%s4293_s30 + $0x10] sm:$0xff]  ;;  %v1412_v12 = vld [vmem:[%s4293_s30 + $0x28] sm:$0xff]  ;;  %v1411_v13 = vld [vmem:[%s4293_s30 + $0x20] sm:$0xff] }
 0x919   :  { %v1414_v15 = vld [vmem:[%s4293_s30 + $0x38] sm:$0xff]  ;;  %v1413_v19 = vld [vmem:[%s4293_s30 + $0x30] sm:$0xff] }
 0x97a   :  { %v1516_v42 = vpop.permute.xlu1 %1515 }
 0x97b   :  { %v1514_v43 = vpop.permute.xlu0 %1513 }
 0x97c   :  { %2996 = vmatprep.mubr.msk.f32.mxu0 %vm241_vm1, %v1514_v43 }
 0x97d   :  { %2997 = vmatmul.mubr.msk.f32.vlgmr.msra.gmra.mrb[18].mxu0 %vm241_vm1, %v1516_v42 }
 0x97e   :  { %3235 = vmatpush3.bf16.xpose.msk.msra.mxu0 %vm3749_vm2, %v3230_v35  ;;  %v3405_v44 = vpop.permute.xlu1 %3404 }
 0x97f   :  { %v3407_v45 = vunpack.i.h.bf16 %v3405_v44  ;;  %v3406_v46 = vunpack.i.l.bf16 %v3405_v44  ;;  %v3400_v47 = vpop.permute.xlu0 %3399 }
 0x980   :  { %v3402_v49 = vunpack.i.h.bf16 %v3400_v47  ;;  %v3401_v50 = vunpack.i.l.bf16 %v3400_v47 }
 0x981   :  { %v3236_v51 = vpack.c.bf16 %v3407_v45, %v3406_v46 }
 0x982   :  { %v3224_v52 = vpack.c.bf16 %v3402_v49, %v3401_v50  ;;  %v1615_v54 = vpop.permute.xlu1 %1614 }
 0x983   :  { %v1613_v53 = vpop.permute.xlu0 %1612  ;;  %3238 = vmatprep.subr.msk.bf16.mxu0 %vm3749_vm2, %v3236_v51 }
 0x984   :  { %3226 = vmatprep.subr.msk.bf16.mxu1 %vm3749_vm2, %v3224_v52  ;;  %3007 = vmatprep.mubr.msk.f32.mxu1 %vm241_vm1, %v1613_v53 }
 0x985   :  { %3229 = vmatpush3.bf16.xpose.msk.msra.mxu1 %vm3749_vm2, %v3224_v52 }
 0x986   :  { %3241 = vmatpush3.bf16.xpose.msk.msra.mxu0 %vm3749_vm2, %v3236_v51  ;;  %v1714_v56 = vpop.permute.xlu1 %1713 }
 0x987   :  { %v1712_v55 = vpop.permute.xlu0 %1711 }
 0x988   :  { %3018 = vmatprep.mubr.msk.f32.mxu0 %vm241_vm1, %v1712_v55 }
 0x98c   :  { %3008 = vmatmul.mubr.msk.f32.vlgmr.msra.gmra.mrb[10].mxu1 %vm241_vm1, %v1615_v54 }
 0x98d   :  { %3019 = vmatmul.mubr.msk.f32.vlgmr.msra.gmra.mrb[20].mxu0 %vm241_vm1, %v1714_v56 }
 0x9dd   :  { %v2987_v59 = vpop.f32.mrb[8].mxu1 }
 0x9de   :  { %v1811_v61 = vadd.f32 %v2987_v59, %v1408_v57  ;;  %v1504_v48 = vpop.f32.mrb[9].mxu1 }
 0x9df   :  { %v1810_v62 = vadd.f32 %v1504_v48, %v1407_v58 }
 0x9e0   :  { %v1821_v63 = vsel %vm86_vm0, %v1811_v61, -inf }
 0x9e1   :  { %1822 = vmax.xlane.f32.xlu1 %v1821_v63  ;;  %v1818_v2 = vsel %vm86_vm0, %v1810_v62, -inf }
 0x9e2   :  { %1819 = vmax.xlane.f32.xlu0 %v1818_v2 }
 0xa50   :  { %v2998_v5 = vpop.f32.mrb[18].mxu0 }
 0xa51   :  { %v1813_v7 = vadd.f32 %v2998_v5, %v1410_v4  ;;  %v1603_v8 = vpop.f32.mrb[19].mxu0 }
 0xa52   :  { %v1812_v9 = vadd.f32 %v1603_v8, %v1409_v6 }
 0xa53   :  { %v1827_v10 = vsel %vm86_vm0, %v1813_v7, -inf }
 0xa54   :  { %1828 = vmax.xlane.f32.xlu0 %v1827_v10  ;;  %v1824_v11 = vsel %vm86_vm0, %v1812_v9, -inf }
 0xa58   :  { %1825 = vmax.xlane.f32.xlu0 %v1824_v11 }
 0xa5f   :  { %v3009_v14 = vpop.f32.mrb[10].mxu1 }
 0xa60   :  { %v1815_v16 = vadd.f32 %v3009_v14, %v1412_v12  ;;  %v3020_v17 = vpop.f32.mrb[20].mxu0  ;;  %v1702_v18 = vpop.f32.mrb[11].mxu1 }
 0xa61   :  { %v1814_v20 = vadd.f32 %v1702_v18, %v1411_v13  ;;  %v1801_v21 = vpop.f32.mrb[21].mxu0  ;;  %v1817_v22 = vadd.f32 %v3020_v17, %v1414_v15 }
 0xa62   :  { %v1833_v23 = vsel %vm86_vm0, %v1815_v16, -inf  ;;  %v1816_v24 = vadd.f32 %v1801_v21, %v1413_v19 }
 0xa63   :  { %1834 = vmax.xlane.f32.xlu1 %v1833_v23  ;;  %v1830_v26 = vsel %vm86_vm0, %v1814_v20, -inf  ;;  %v1839_v27 = vsel %vm86_vm0, %v1817_v22, -inf }
 0xa64   :  { %1831 = vmax.xlane.f32.xlu0 %v1830_v26  ;;  %v1836_v28 = vsel %vm86_vm0, %v1816_v24, -inf }
 0xa67   :  { %1840 = vmax.xlane.f32.xlu1 %v1839_v27 }
 0xa68   :  { %1837 = vmax.xlane.f32.xlu0 %v1836_v28 }
 0xa6e   :  { %v1823_v29 = vpop.xlane.xlu1 %1822 }
 0xa6f   :  { %v1820_v1 = vpop.xlane.xlu0 %1819  ;;  %v1843_v31 = vsub.f32 %v1811_v61, %v1823_v29 }
 0xa70   :  { %v1842_v0 = vsub.f32 %v1810_v62, %v1820_v1 }
 0xa71   :  { %v1852_v32 = vmul.f32 1.442695, %v1843_v31 }
 0xa72   :  { %v1850_v30 = vmul.f32 1.442695, %v1842_v0 }
 0xa74   :  { %3488 = vpow2.f32 %v1850_v30 }
 0xa75   :  { %3490 = vpow2.f32 %v1852_v32 }
 0xa78   :  { %3414 = vrot.lane.b32.xlu1 %v3934_v60, %s3548_s2 }
 0xa7c   :  { %3419 = vrot.lane.b32.xlu1 %v3940_v3, %s3549_s29 }
 0xa7e   :  { %3409 = vrot.lane.b32.xlu0 %v3934_v60, %s3549_s29  ;;  %v4051_v33 = vpop.eup %3488  ;;  %s4296_s29 = sld [smem:[#allocation13_spill]] }
 0xa7f   :  { %v1866_v34 = vsel %vm86_vm0, %v4051_v33, 0.0  ;;  %v4055_v35 = vpop.eup %3490 }
 0xa80   :  { %3424 = vrot.lane.b32.xlu1 %v3940_v3, %s3548_s2  ;;  %v1869_v36 = vsel %vm86_vm0, %v4055_v35, 0.0 }
 0xa82   :  { %3429 = vrot.lane.b32.xlu0 %v3934_v60, %s3550_s0 }
 0xa84   :  { %3434 = vrot.lane.b32.xlu1 %v3934_v60, %s3552_s7 }
 0xaa1   :  { %1867 = vadd.xlane.f32.xlu0 %v1866_v34 }
 0xaa8   :  { %1870 = vadd.xlane.f32.xlu1 %v1869_v36 }
 0xae1   :  { %v1829_v60 = vpop.xlane.xlu0 %1828 }
 0xae2   :  { %v1845_v37 = vsub.f32 %v1813_v7, %v1829_v60 }
 0xae4   :  { %v1856_v38 = vmul.f32 1.442695, %v1845_v37 }
 0xae5   :  { %v1826_v39 = vpop.xlane.xlu0 %1825 }
 0xae6   :  { %3492 = vpow2.f32 %v1856_v38  ;;  %v1844_v40 = vsub.f32 %v1812_v9, %v1826_v39 }
 0xae8   :  { %v1854_v42 = vmul.f32 1.442695, %v1844_v40 }
 0xaea   :  { %3494 = vpow2.f32 %v1854_v42 }
 0xaf0   :  { %v4059_v43 = vpop.eup %3492  ;;  %v1835_v44 = vpop.xlane.xlu1 %1834 }
 0xaf1   :  { %v1847_v45 = vsub.f32 %v1815_v16, %v1835_v44  ;;  %v1832_v46 = vpop.xlane.xlu0 %1831  ;;  %v1875_v47 = vsel %vm86_vm0, %v4059_v43, 0.0 }
 0xaf2   :  { %v1846_v49 = vsub.f32 %v1814_v20, %v1832_v46  ;;  %1876 = vadd.xlane.f32.xlu1 %v1875_v47 }
 0xaf3   :  { %v1860_v50 = vmul.f32 1.442695, %v1847_v45 }
 0xaf4   :  { %v4063_v51 = vpop.eup %3494  ;;  %v1858_v52 = vmul.f32 1.442695, %v1846_v49  ;;  %v1841_v53 = vpop.xlane.xlu1 %1840 }
 0xaf5   :  { %3496 = vpow2.f32 %v1860_v50  ;;  %v1849_v54 = vsub.f32 %v1817_v22, %v1841_v53  ;;  %v1838_v55 = vpop.xlane.xlu0 %1837  ;;  %v1872_v56 = vsel %vm86_vm0, %v4063_v51, 0.0 }
 0xaf6   :  { %3498 = vpow2.f32 %v1858_v52  ;;  %v1848_v57 = vsub.f32 %v1816_v24, %v1838_v55  ;;  %1873 = vadd.xlane.f32.xlu0 %v1872_v56 }
 0xaf7   :  { %v1864_v58 = vmul.f32 1.442695, %v1849_v54 }
 0xaf8   :  { %v1862_v59 = vmul.f32 1.442695, %v1848_v57  ;;  %v3415_v61 = vpop.permute.xlu1 %3414 }
 0xaf9   :  { %3500 = vpow2.f32 %v1864_v58  ;;  %v3417_v48 = vunpack.i.h.bf16 %v3415_v61  ;;  %v3416_v62 = vunpack.i.l.bf16 %v3415_v61  ;;  %v3410_v63 = vpop.permute.xlu0 %3409 }
 0xafa   :  { %3502 = vpow2.f32 %v1862_v59  ;;  %v3412_v2 = vunpack.i.h.bf16 %v3410_v63  ;;  %v3411_v4 = vunpack.i.l.bf16 %v3410_v63 }
 0xafb   :  { %v3250_v5 = vpack.c.bf16 %v3417_v48, %v3416_v62 }
 0xafc   :  { %v3242_v6 = vpack.c.bf16 %v3412_v2, %v3411_v4  ;;  %v3420_v7 = vpop.permute.xlu1 %3419  ;;  %v1415_v2 = vld [vmem:[%s4260_s18] sm:$0xff]  ;;  %v1416_v4 = vld [vmem:[%s4260_s18 + $0x8] sm:$0xff] }
 0xafd   :  { %v3422_v8 = vunpack.i.h.bf16 %v3420_v7  ;;  %v3421_v9 = vunpack.i.l.bf16 %v3420_v7  ;;  %3251 = vmatprep.subr.bf16.mxu0 %v3250_v5  ;;  %v3430_v10 = vpop.permute.xlu0 %3429 }
 0xafe   :  { %v3432_v11 = vunpack.i.h.bf16 %v3430_v10  ;;  %v3431_v12 = vunpack.i.l.bf16 %v3430_v10  ;;  %3243 = vmatprep.subr.bf16.mxu1 %v3242_v6  ;;  %3253 = vmatpush3.bf16.msra.mxu0 %v3250_v5  ;;  %v3274_v5 = vpack.c.bf16 %v1416_v4, %v1415_v2  ;;  %v2545_v2 = vld [vmem:[%s4264_s22 + $0x50] sm:$0xff]  ;;  %v2546_v4 = vld [vmem:[%s4264_s22 + $0x58] sm:$0xff] }
 0xaff   :  { %v4067_v13 = vpop.eup %3496  ;;  %v3246_v14 = vpack.c.bf16 %v3422_v8, %v3421_v9  ;;  %3245 = vmatpush3.bf16.msra.mxu1 %v3242_v6  ;;  %v1417_v8 = vld [vmem:[%s4260_s18 + $0x10] sm:$0xff]  ;;  %v1418_v9 = vld [vmem:[%s4260_s18 + $0x18] sm:$0xff] }
 0xb00   :  { %v4069_v15 = vpop.eup %3498  ;;  %v3425_v16 = vpop.permute.xlu1 %3424  ;;  %v1881_v17 = vsel %vm86_vm0, %v4067_v13, 0.0  ;;  %v3258_v21 = vpack.c.bf16 %v3432_v11, %v3431_v12  ;;  %v3278_v10 = vpack.c.bf16 %v1418_v9, %v1417_v8 }
 0xb01   :  { %v3427_v18 = vunpack.i.h.bf16 %v3425_v16  ;;  %v3426_v19 = vunpack.i.l.bf16 %v3425_v16  ;;  %1882 = vadd.xlane.f32.xlu1 %v1881_v17  ;;  %3247 = vmatprep.subr.bf16.mxu1 %v3246_v14  ;;  %v1878_v20 = vsel %vm86_vm0, %v4069_v15, 0.0 }
 0xb02   :  { %1879 = vadd.xlane.f32.xlu0 %v1878_v20 }
 0xb03   :  { %v4075_v22 = vpop.eup %3500  ;;  %v3254_v23 = vpack.c.bf16 %v3427_v18, %v3426_v19  ;;  %3249 = vmatpush3.bf16.msra.mxu1 %v3246_v14 }
 0xb04   :  { %v4077_v24 = vpop.eup %3502  ;;  %v3435_v26 = vpop.permute.xlu1 %3434  ;;  %3259 = vmatprep.subr.bf16.mxu1 %v3258_v21  ;;  %v1887_v27 = vsel %vm86_vm0, %v4075_v22, 0.0 }
 0xb05   :  { %v3437_v28 = vunpack.i.h.bf16 %v3435_v26  ;;  %v3436_v1 = vunpack.i.l.bf16 %v3435_v26  ;;  %1888 = vadd.xlane.f32.xlu1 %v1887_v27  ;;  %3255 = vmatprep.subr.bf16.mxu0 %v3254_v23  ;;  %v1884_v0 = vsel %vm86_vm0, %v4077_v24, 0.0 }
 0xb06   :  { %3257 = vmatpush3.bf16.msra.mxu0 %v3254_v23  ;;  %1885 = vadd.xlane.f32.xlu0 %v1884_v0 }
 0xb07   :  { %v3266_v29 = vpack.c.bf16 %v3437_v28, %v3436_v1  ;;  %v2729_v28 = vld [vmem:[%s4261_s19] ss:$0 sm:$0xff] }
 0xb09   :  { %3267 = vmatprep.subr.bf16.mxu0 %v3266_v29 }
 0xb16   :  { %3444 = vrot.lane.b32.xlu1 %v3940_v3, %s3552_s7 }
 0xb1c   :  { %3439 = vrot.lane.b32.xlu0 %v3940_v3, %s3550_s0 }
 0xb2e   :  { %v1868_v30 = vpop.xlane.xlu0 %1867 }
 0xb2f   :  { %3504 = vrcp.f32 %v1868_v30 }
 0xb35   :  { %v1871_v31 = vpop.xlane.xlu1 %1870 }
 0xb36   :  { %3506 = vrcp.f32 %v1871_v31 }
 0xb39   :  { %v3505_v32 = vpop.eup %3504 }
 0xb3a   :  { %v1898_v34 = vmul.f32 %v3505_v32, %v4051_v33 }
 0xb3c   :  { %3029 = vmatprep.mubr.msk.f32.mxu1 %vm86_vm0, %v1898_v34 }
 0xb40   :  { %v3507_v36 = vpop.eup %3506 }
 0xb41   :  { %v1899_v60 = vmul.f32 %v3507_v36, %v4055_v35 }
 0xb43   :  { %3030 = vmatmul.mubr.msk.f32.vlgmr.msra.gmra.mrb[12].mxu1 %vm86_vm0, %v1899_v60 }
 0xb44   :  { %3261 = vmatpush3.bf16.msra.mxu1 %v3258_v21 }
 0xb7f   :  { %v1877_v37 = vpop.xlane.xlu1 %1876 }
 0xb80   :  { %3508 = vrcp.f32 %v1877_v37 }
 0xb83   :  { %v1874_v38 = vpop.xlane.xlu0 %1873 }
 0xb84   :  { %3510 = vrcp.f32 %v1874_v38 }
 0xb8a   :  { %v3509_v3 = vpop.eup %3508 }
 0xb8b   :  { %v1901_v33 = vmul.f32 %v3509_v3, %v4059_v43 }
 0xb8e   :  { %v3511_v39 = vpop.eup %3510  ;;  %v1883_v40 = vpop.xlane.xlu1 %1882 }
 0xb8f   :  { %v1880_v42 = vpop.xlane.xlu0 %1879  ;;  %v1900_v44 = vmul.f32 %v3511_v39, %v4063_v51 }
 0xb90   :  { %3512 = vrcp.f32 %v1880_v42 }
 0xb91   :  { %3514 = vrcp.f32 %v1883_v40  ;;  %3040 = vmatprep.mubr.msk.f32.mxu0 %vm86_vm0, %v1900_v44 }
 0xb92   :  { %v1889_v35 = vpop.xlane.xlu1 %1888  ;;  %3041 = vmatmul.mubr.msk.f32.vlgmr.msra.gmra.mrb[22].mxu0 %vm86_vm0, %v1901_v33  ;;  %v2441_v33 = vld [vmem:[%s4262_s20] sm:$0xff] }
 0xb93   :  { %3516 = vrcp.f32 %v1889_v35  ;;  %3269 = vmatpush3.bf16.msra.mxu0 %v3266_v29  ;;  %v1886_v45 = vpop.xlane.xlu0 %1885  ;;  %v2442_v35 = vld [vmem:[%s4262_s20 + $0x8] sm:$0xff] }
 0xb94   :  { %3518 = vrcp.f32 %v1886_v45  ;;  %v3282_v45 = vpack.c.bf16 %v2442_v35, %v2441_v33 }
 0xb96   :  { %v3445_v46 = vpop.permute.xlu1 %3444 }
 0xb97   :  { %v3447_v47 = vunpack.i.h.bf16 %v3445_v46  ;;  %v3446_v49 = vunpack.i.l.bf16 %v3445_v46  ;;  %v3440_v50 = vpop.permute.xlu0 %3439  ;;  %v2443_v46 = vld [vmem:[%s4262_s20 + $0x10] sm:$0xff] }
 0xb98   :  { %v3442_v52 = vunpack.i.h.bf16 %v3440_v50  ;;  %v3441_v53 = vunpack.i.l.bf16 %v3440_v50  ;;  %v2535_v50 = vld [vmem:[%s4264_s22] sm:$0xff] }
 0xb99   :  { %v3270_v51 = vpack.c.bf16 %v3447_v47, %v3446_v49  ;;  %v2444_v47 = vld [vmem:[%s4262_s20 + $0x18] sm:$0xff] }
 0xb9a   :  { %v3513_v54 = vpop.eup %3512  ;;  %v3262_v43 = vpack.c.bf16 %v3442_v52, %v3441_v53  ;;  %v3286_v49 = vpack.c.bf16 %v2444_v47, %v2443_v46  ;;  %v2536_v52 = vld [vmem:[%s4264_s22 + $0x8] sm:$0xff]  ;;  %v2537_v53 = vld [vmem:[%s4264_s22 + $0x10] sm:$0xff] }
 0xb9b   :  { %v3515_v55 = vpop.eup %3514  ;;  %3271 = vmatprep.subr.bf16.mxu0 %v3270_v51  ;;  %v1902_v56 = vmul.f32 %v3513_v54, %v4069_v15  ;;  %v2538_v54 = vld [vmem:[%s4264_s22 + $0x18] sm:$0xff] }
 0xb9c   :  { %3263 = vmatprep.subr.bf16.mxu1 %v3262_v43  ;;  %3273 = vmatpush3.bf16.msra.mxu0 %v3270_v51  ;;  %v1903_v59 = vmul.f32 %v3515_v55, %v4067_v13  ;;  %v3290_v51 = vpack.c.bf16 %v2536_v52, %v2535_v50  ;;  %v2539_v55 = vld [vmem:[%s4264_s22 + $0x20] sm:$0xff] }
 0xb9d   :  { %v3517_v57 = vpop.eup %3516  ;;  %3265 = vmatpush3.bf16.msra.mxu1 %v3262_v43  ;;  %3051 = vmatprep.mubr.msk.f32.mxu1 %vm86_vm0, %v1902_v56  ;;  %v3294_v43 = vpack.c.bf16 %v2538_v54, %v2537_v53  ;;  %v2540_v56 = vld [vmem:[%s4264_s22 + $0x28] sm:$0xff] }
 0xb9e   :  { %v3519_v58 = vpop.eup %3518  ;;  %v1905_v48 = vmul.f32 %v3517_v57, %v4075_v22  ;;  %3275 = vmatprep.subr.bf16.mxu1 %v3274_v5  ;;  %3283 = vmatprep.subr.bf16.mxu0 %v3282_v45  ;;  %v3298_v57 = vpack.c.bf16 %v2540_v56, %v2539_v55 }
 0xb9f   :  { %v1904_v61 = vmul.f32 %v3519_v58, %v4077_v24  ;;  %v2541_v58 = vld [vmem:[%s4264_s22 + $0x30] sm:$0xff] }
 0xba0   :  { %3052 = vmatmul.mubr.msk.f32.vlgmr.msra.gmra.mrb[14].mxu1 %vm86_vm0, %v1903_v59  ;;  %v2542_v59 = vld [vmem:[%s4264_s22 + $0x38] sm:$0xff] }
 0xba1   :  { %3062 = vmatprep.mubr.msk.f32.mxu0 %vm86_vm0, %v1904_v61  ;;  %3277 = vmatpush3.bf16.msra.mxu1 %v3274_v5  ;;  %v3302_v61 = vpack.c.bf16 %v2542_v59, %v2541_v58  ;;  %v3310_v5 = vpack.c.bf16 %v2546_v4, %v2545_v2 }
 0xba2   :  { %3063 = vmatmul.mubr.msk.f32.vlgmr.msra.gmra.mrb[24].mxu0 %vm86_vm0, %v1905_v48  ;;  %3279 = vmatprep.subr.bf16.mxu1 %v3278_v10  ;;  %v2543_v48 = vld [vmem:[%s4264_s22 + $0x40] sm:$0xff] }
 0xba3   :  { %3285 = vmatpush3.bf16.msra.mxu0 %v3282_v45 }
 0xba4   :  { %3287 = vmatprep.subr.bf16.mxu0 %v3286_v49 }
 0xba5   :  { %3281 = vmatpush3.bf16.msra.mxu1 %v3278_v10 }
 0xba6   :  { %3291 = vmatprep.subr.bf16.mxu1 %v3290_v51 }
 0xba7   :  { %3289 = vmatpush3.bf16.msra.mxu0 %v3286_v49 }
 0xc16   :  { %v3031_v62 = vpop.f32.mrb[12].mxu1 }
 0xc17   :  { %v1990_v63 = vpop.f32.mrb[13].mxu1 }
 0xc65   :  { %v3042_v6 = vpop.f32.mrb[22].mxu0 }
 0xc66   :  { %2282 = vrot.lane.b32.xlu1 %v3042_v6, %s3560_s25  ;;  %v2083_v7 = vpop.f32.mrb[23].mxu0  ;;  %v2547_v6 = vld [vmem:[%s4264_s22 + $0x60] sm:$0xff] }
 0xc67   :  { %2280 = vrot.lane.b32.xlu0 %v2083_v7, %s3560_s25  ;;  %v2548_v7 = vld [vmem:[%s4264_s22 + $0x68] sm:$0xff] }
 0xc68   :  { %v3314_v8 = vpack.c.bf16 %v2548_v7, %v2547_v6 }
 0xc73   :  { %v3053_v11 = vpop.f32.mrb[14].mxu1 }
 0xc74   :  { %2290 = vrot.lane.b32.xlu1 %v3053_v11, %s4294_s3  ;;  %v2176_v12 = vpop.f32.mrb[15].mxu1 }
 0xc75   :  { %v3064_v13 = vpop.f32.mrb[24].mxu0  ;;  %2288 = vrot.lane.b32.xlu0 %v2176_v12, %s4294_s3 }
 0xc76   :  { %v2269_v14 = vpop.f32.mrb[25].mxu0 }
 0xc78   :  { %2298 = vrot.lane.b32.xlu1 %v3064_v13, %s4295_s8 }
 0xc79   :  { %2296 = vrot.lane.b32.xlu0 %v2269_v14, %s4295_s8 }
 0xcd8   :  { %v2283_v15 = vpop.permute.xlu1 %2282 }
 0xcd9   :  { %v2281_v16 = vpop.permute.xlu0 %2280  ;;  %v2303_v21 = vsel %vm241_vm1, %v3031_v62, %v2283_v15  ;;  %v2544_v62 = vld [vmem:[%s4264_s22 + $0x48] sm:$0xff] }
 0xcda   :  { %v2302_v19 = vsel %vm241_vm1, %v1990_v63, %v2281_v16  ;;  %v3306_v63 = vpack.c.bf16 %v2544_v62, %v2543_v48  ;;  %v2732_v16 = vld [vmem:[%s4296_s29] ss:$0 sm:$0xff] }
 0xce6   :  { %v2291_v17 = vpop.permute.xlu1 %2290 }
 0xce7   :  { %v2289_v18 = vpop.permute.xlu0 %2288  ;;  %v2305_v24 = vsel %vm606_vm3, %v2303_v21, %v2291_v17 }
 0xce8   :  { %v2304_v22 = vsel %vm606_vm3, %v2302_v19, %v2289_v18  ;;  %v2733_v18 = vld [vmem:[%s4251_s9] ss:$0 sm:$0xff] }
 0xcea   :  { %v2299_v20 = vpop.permute.xlu1 %2298 }
 0xceb   :  { %v2297_v23 = vpop.permute.xlu0 %2296  ;;  %v2307_v27 = vsel %vm1071_vm4, %v2305_v24, %v2299_v20 }
 0xcec   :  { %v2306_v26 = vsel %vm1071_vm4, %v2304_v22, %v2297_v23 }
 0xced   :  { %3073 = vmatprep.mubr.msk.f32.mxu1 %vm86_vm0, %v2306_v26  ;;  %v2549_v26 = vld [vmem:[%s4264_s22 + $0x70] sm:$0xff] }
 0xcee   :  { %3074 = vmatmul.mubr.msk.f32.vlgmr.msra.gmra.mrb[16].mxu1 %vm86_vm0, %v2307_v27  ;;  %v2550_v27 = vld [vmem:[%s4264_s22 + $0x78] sm:$0xff]  ;;  %s3562_s22 = smov [#allocation2]  }
 0xcef   :  { %3293 = vmatpush3.bf16.msra.mxu1 %v3290_v51  ;;  %s2644_s18 = sshll.u32 %s3562_s22, 4  ;;  %s2645_s18 = int_to_ptr.vmem [resolvable:$true] %s2644_s18 }
 0xcf0   :  { %3295 = vmatprep.subr.bf16.mxu1 %v3294_v43  ;;  %p3529_p1 = scmp.lt.s32.totalorder %s2645_s18, %s2645_s18 }
 0xcf3   :  { %3297 = vmatpush3.bf16.msra.mxu1 %v3294_v43 }
 0xcf4   :  { %3299 = vmatprep.subr.bf16.mxu1 %v3298_v57 }
 0xcf7   :  { %3301 = vmatpush3.bf16.msra.mxu1 %v3298_v57 }
 0xcf8   :  { %3303 = vmatprep.subr.bf16.mxu1 %v3302_v61 }
 0xcfb   :  { %3305 = vmatpush3.bf16.msra.mxu1 %v3302_v61 }
 0xcfc   :  { %3307 = vmatprep.subr.bf16.mxu1 %v3306_v63 }
 0xcff   :  { %3309 = vmatpush3.bf16.msra.mxu1 %v3306_v63 }
 0xd00   :  { %3311 = vmatprep.subr.bf16.mxu1 %v3310_v5 }
 0xd03   :  { %3313 = vmatpush3.bf16.msra.mxu1 %v3310_v5 }
 0xd04   :  { %3315 = vmatprep.subr.bf16.mxu1 %v3314_v8 }
 0xd07   :  { %3317 = vmatpush3.bf16.msra.mxu1 %v3314_v8 }
 0xdc1   :  { %v3075_v1 = vpop.f32.mrb[16].mxu1 }
 0xdc2   :  { %v2392_v0 = vadd.f32 %v3075_v1, %v2729_v28  ;;  %v2386_v29 = vpop.f32.mrb[17].mxu1  ;;  %v2734_v1 = vld [vmem:[%s4263_s21] ss:$0 sm:$0xff]  ;;  %s3524_s21 = scalar_lea.vmem %s2645_s18, 256 }
 0xdc3   :  { %v2387_v30 = vadd.f32 %v2729_v28, %v2386_v29  ;;  %v3318_v28 = vpack.c.bf16 %v2550_v27, %v2549_v26  ;;  %p3525_p0 = scmp.ne.s32.totalorder %s2645_s18, %s3524_s21  ;;  %p3530_p2 = scmp.lt.s32.totalorder %s3524_s21, %s3524_s21 }
 0xdc4   :  { %v4133_v31 = vadd.f32 %v2392_v0, %v3878_v41 }
 0xdc5   :  { %v4136_v32 = vadd.f32 %v2387_v30, %v3881_v25  ;;  %3319 = vmatprep.subr.bf16.mxu1 %v3318_v28  ;;  %p3531_p3 = por %p3530_p2, %p3529_p1 }
 0xdc6   :  { %v2402_v34 = vsel %vm86_vm0, %v4133_v31, 0.0  ;;  %3321 = vmatpush3.bf16.msra.mxu1 %v3318_v28 }
 0xdc7   :  { %2403 = vadd.xlane.f32.xlu1 %v2402_v34  ;;  %v2399_v36 = vsel %vm86_vm0, %v4136_v32, 0.0  ;;  %p3532_p4 = pnand %p3531_p3, %p3525_p0 }
 0xdc8   :  { %2400 = vadd.xlane.f32.xlu0 %v2399_v36 }
 0xe54   :  { %v2404_v60 = vpop.xlane.xlu1 %2403 }
 0xe55   :  { %v2406_v37 = vmul.f32 0.03125, %v2404_v60  ;;  %v2401_v38 = vpop.xlane.xlu0 %2400 }
 0xe56   :  { %v2405_v3 = vmul.f32 0.03125, %v2401_v38  ;;  %v2737_v38 = vld [vmem:[%s4265_s23] ss:$0 sm:$0xff] }
 0xe57   :  { %v4143_v39 = vsub.f32 %v4133_v31, %v2406_v37 }
 0xe58   :  { %v2407_v41 = vsub.f32 %v4136_v32, %v2405_v3 }
 0xe59   :  { %v2410_v42 = vmul.f32 %v4143_v39, %v4143_v39 }
 0xe5a   :  { %v2409_v40 = vmul.f32 %v2407_v41, %v2407_v41 }
 0xe5b   :  { %v2414_v44 = vsel %vm86_vm0, %v2410_v42, 0.0 }
 0xe5c   :  { %v2411_v25 = vsel %vm86_vm0, %v2409_v40, 0.0 }
 0xe5d   :  { %2412 = vadd.xlane.f32.xlu0 %v2411_v25 }
 0xe61   :  { %2415 = vadd.xlane.f32.xlu0 %v2414_v44 }
 0xeea   :  { %v2413_v9 = vpop.xlane.xlu0 %2412 }
 0xeeb   :  { %v2417_v10 = vmul.f32 0.03125, %v2413_v9 }
 0xeed   :  { %v2419_v11 = vadd.f32 1e-06, %v2417_v10 }
 0xeee   :  { %v2416_v12 = vpop.xlane.xlu0 %2415 }
 0xeef   :  { %3520 = vrsqrt.f32 %v2419_v11  ;;  %v2418_v13 = vmul.f32 0.03125, %v2416_v12 }
 0xef1   :  { %v2420_v14 = vadd.f32 1e-06, %v2418_v13 }
 0xef3   :  { %3522 = vrsqrt.f32 %v2420_v14 }
 0xef9   :  { %v3521_v15 = vpop.eup %3520 }
 0xefa   :  { %v2423_v17 = vmul.f32 %v3521_v15, %v2407_v41 }
 0xefc   :  { %v2431_v19 = vmul.f32 %v2732_v16, %v2423_v17 }
 0xefd   :  { %v3523_v20 = vpop.eup %3522 }
 0xefe   :  { %v2424_v21 = vmul.f32 %v3523_v20, %v4143_v39  ;;  %v2439_v22 = vadd.f32 %v2733_v18, %v2431_v19 }
 0xf00   :  { %v2432_v23 = vmul.f32 %v2732_v16, %v2424_v21  ;;  %3084 = vmatprep.mubr.msk.f32.mxu0 %vm86_vm0, %v2439_v22 }
 0xf02   :  { %v2440_v24 = vadd.f32 %v2733_v18, %v2432_v23 }
 0xf04   :  { %3085 = vmatmul.mubr.msk.f32.vlgmr.msra.gmra.mrb[26].mxu0 %vm86_vm0, %v2440_v24 }
 0xfd7   :  { %v3086_v0 = vpop.f32.mrb[26].mxu0 }
 0xfd8   :  { %v2530_v29 = vadd.f32 %v3086_v0, %v2734_v1  ;;  %v2524_v30 = vpop.f32.mrb[27].mxu0 }
 0xfd9   :  { %v2525_v34 = vadd.f32 %v2734_v1, %v2524_v30 }
 0xfda   :  { %v2534_v60 = vmax.f32 %v2530_v29, 0.0 }
 0xfdb   :  { %v2533_v36 = vmax.f32 %v2525_v34, 0.0 }
 0xfdd   :  { %3119 = vmatprep.mubr.f32.mxu1 %v2533_v36 }
 0xfde   :  { %3120 = vmatmul.mubr.f32.vlgmr.msra.gmra.mrb[18].mxu1 %v2534_v60 }
0x10b1   :  { %v3121_v37 = vpop.f32.mrb[18].mxu1 }
0x10b2   :  { %v2627_v3 = vadd.f32 %v3121_v37, %v4133_v31  ;;  %v2617_v39 = vpop.f32.mrb[19].mxu1 }
0x10b3   :  { %v2626_v41 = vadd.f32 %v2617_v39, %v4136_v32 }
0x10b4   :  { %v2636_v40 = vadd.f32 %v2737_v38, %v2627_v3 }
0x10b5   :  { %v2635_v25 = vadd.f32 %v2737_v38, %v2626_v41 }
0x10b6   :  { %2638 = vst.msk [vmem:[#allocation2 + $0x8] sm:$0xff] %vm86_vm0, %v2636_v40 }
0x10b7   :  { %2637 = vst.msk [vmem:[#allocation2] sm:$0xff] %vm86_vm0, %v2635_v25 }
0x10b8   :  { %3535 = shalt.err (!%p3532_p4)
}
0x10b9   :  { %s3536_s19 = scalar_lea.hbm %s4266_s24, 256 }
0x10ba   :  { %p3537_p5 = scmp.ne.s32.totalorder %s4266_s24, %s3536_s19  ;;  %p3540_p6 = scmp.lt.u32.totalorder %s3536_s19, %s4266_s24 }
0x10bc   :  { %p3542_p7 = pnand %p3540_p6, %p3537_p5 }
0x10be   :  { %3545 = shalt.err (!%p3542_p7)
}
0x10bf   :  { %s3563_s14 = smov 128  }
0x10c0   :  { %2650 = dma.vmem_to_hbm [thread:$0]  %s2645_s18, 256, %s4266_s24, [#allocation3], %s3563_s14, %s3563_s14, %s3560_s25  }
0x10c1   :  { %3546 = dma.done.wait [#allocation3], 256  }
0x10c2   :  { %3547 = vsyncadd [#allocation3], 4294967040 }
0x10c3   :  { %2654 = vsyncpa [#allocation3], 1 }

</bundles_post_ra>
